<compile_context>
chip_gen: v5e
topology: v5e:2x2
jax: 0.10.0
libtpu: 0.0.40
codegen_flags: <defaults>
</compile_context>

<pallas_src>
import functools

import jax
import jax.numpy as jnp
from jax.experimental import pallas as pl
from jax.experimental.pallas import tpu as pltpu


def _layer_norm(x, g, b, eps=1e-5):
    mu = jnp.mean(x, axis=-1, keepdims=True)
    var = jnp.mean(jnp.square(x - mu), axis=-1, keepdims=True)
    return (x - mu) * jax.lax.rsqrt(var + eps) * g + b


def slot_attention_kernel(
    x_ref,        # (Bt*N, D_in)   input features, pre-flattened in the wrapper
    slots_ref,    # (1, Bt*K, D)   initial slots (stacked per batch tile)
    wkv_ref,      # (D_in, 2D)     [Wk | Wv]
    wq_ref,       # (D, D)
    wi_ref,       # (D, 3D)        GRU input weights  [r | z | n]
    wh_ref,       # (D, 3D)        GRU hidden weights [r | z | n]
    w1_ref,       # (D, 4D)        MLP up   (transposed torch layout, lane-dense)
    w2_ref,       # (D, 4D)        MLP down (native torch layout, lane-dense)
    bias_ref,     # (12, W)        packed bias / LayerNorm vectors (left-aligned)
    out_ref,      # (1, Bt*K, D)
    *, num_iterations, batch_tile):
    f32 = jnp.float32
    Bt = batch_tile
    _, BtK, D = out_ref.shape
    K = BtK // Bt
    BtN, Din = x_ref.shape
    N = BtN // Bt
    H = w1_ref.shape[1]
    scale = D ** -0.5

    def bvec(row, width):
        # Read a packed bias / LayerNorm row from VMEM at its use site.
        return bias_ref[row:row + 1, :width]

    # ---- input LayerNorm + fused K/V projection for the whole batch tile ----
    x_n = _layer_norm(x_ref[...], bvec(0, Din), bvec(1, Din))            # (Bt*N, Din)
    kv = jnp.dot(x_n, wkv_ref[...], preferred_element_type=f32) + bvec(2, 2 * D)
    k_all = kv[:, :D]                                                    # (Bt*N, D)
    v_all = kv[:, D:]                                                    # (Bt*N, D)

    slots = slots_ref[0].astype(f32)                                     # (Bt*K, D)

    # Block-diagonal (same-batch) mask for the attention stage; loop-invariant.
    if Bt > 1:
        row_b = jax.lax.broadcasted_iota(jnp.int32, (Bt * K, Bt * N), 0) // K
        col_b = jax.lax.broadcasted_iota(jnp.int32, (Bt * K, Bt * N), 1) // N
        same_batch = row_b == col_b
    neg_big = jnp.float32(-1e30)

    def one_iteration(slots):
        slots_prev = slots
        sn = _layer_norm(slots, bvec(3, D), bvec(4, D))
        q = (jnp.dot(sn, wq_ref[...], preferred_element_type=f32)
             + bvec(5, D)) * scale                                       # (Bt*K, D)

        # logits[i, n] = q_i . k_n  (block-diagonal across the batch tile)
        logits = jax.lax.dot_general(
            q, k_all, dimension_numbers=(((1,), (1,)), ((), ())),
            preferred_element_type=f32)                                  # (Bt*K, Bt*N)
        if Bt > 1:
            logits = jnp.where(same_batch, logits, neg_big)

        # softmax over slots (axis 0), then +eps, then renormalize over N.
        m = jnp.max(logits, axis=0, keepdims=True)
        e = jnp.exp(logits - m)
        attn = e * pl.reciprocal(jnp.sum(e, axis=0, keepdims=True), approx=True)
        if Bt > 1:
            attn = jnp.where(same_batch, attn + 1e-8, 0.0)
        else:
            attn = attn + 1e-8
        attn_norm = attn * (1.0 / jnp.sum(attn, axis=1, keepdims=True))  # exact

        updates = jnp.dot(attn_norm, v_all, preferred_element_type=f32)  # (Bt*K, D)

        # GRU cell (PyTorch gate order r, z, n); fused 3*D-wide matmuls.
        gi = jnp.dot(updates, wi_ref[...], preferred_element_type=f32) + bvec(6, 3 * D)
        gh = jnp.dot(slots_prev, wh_ref[...], preferred_element_type=f32) + bvec(7, 3 * D)
        r = jax.nn.sigmoid(gi[:, :D] + gh[:, :D])
        z = jax.nn.sigmoid(gi[:, D:2 * D] + gh[:, D:2 * D])
        n_ = jnp.tanh(gi[:, 2 * D:] + r * gh[:, 2 * D:])
        new_slots = (1.0 - z) * n_ + z * slots_prev

        # residual MLP; w2 kept lane-dense (D, 4D), contract over its last dim.
        sf = _layer_norm(new_slots, bvec(8, D), bvec(9, D))
        h = jnp.maximum(
            jnp.dot(sf, w1_ref[...], preferred_element_type=f32) + bvec(10, H), 0.0)
        down = jax.lax.dot_general(
            h, w2_ref[...], dimension_numbers=(((1,), (1,)), ((), ())),
            preferred_element_type=f32)
        return new_slots + down + bvec(11, D)

    if num_iterations <= 4:
        for _ in range(num_iterations):     # tiny fixed count: fully unrolled
            slots = one_iteration(slots)
    else:
        # Visible loop structure bounds vreg live ranges for larger counts.
        slots = jax.lax.fori_loop(0, num_iterations,
                                  lambda _, s: one_iteration(s), slots,
                                  unroll=True)

    out_ref[0] = slots


def _default_batch_tile(B):
    """One grid step on single-TC chips (v5e/v6e); 2 parallel steps otherwise."""
    if B < 2 or B % 2 != 0:
        return B
    try:
        kind = jax.devices()[0].device_kind.lower()
    except Exception:
        kind = ""
    single_tc = any(t in kind for t in
                    ("v5e", "v5 lite", "v5lite", "v6e", "v6 lite", "v6lite"))
    return B if single_tc else B // 2


def _cost_estimate(B, N, Din, K, D, H, iters):
    flops = 2 * B * N * Din * (2 * D)                    # fused K/V projection
    per_iter = (2 * K * D * D                            # q projection
                + 2 * K * N * D * 2                      # logits + updates
                + 2 * K * D * (3 * D) * 2                # GRU ih + hh matmuls
                + 2 * K * D * H * 2)                     # MLP up + down
    flops += iters * B * per_iter
    transcendentals = iters * B * (K * N + 3 * K * D)    # exp, sigmoid, tanh
    bytes_accessed = 4 * (B * N * Din + 2 * B * K * D
                          + Din * 2 * D + D * D + 2 * D * 3 * D + 2 * D * H
                          + 12 * 128)
    return pl.CostEstimate(flops=flops, transcendentals=transcendentals,
                           bytes_accessed=bytes_accessed)


def slot_attention_forward(inputs, slots_init, p, num_iterations, batch_tile=None):
    B, N, D_in = inputs.shape
    _, K, D = slots_init.shape
    H = p["w1"].shape[0]

    if batch_tile is None:
        batch_tile = _default_batch_tile(B)
    assert B % batch_tile == 0
    grid_b = B // batch_tile

    t = jnp.transpose  # torch (out, in) -> (in, out)

    # Fused / concatenated weight matrices (all lane-dense layouts).
    wkv = jnp.concatenate([t(p["wk"]), t(p["wv"])], axis=1)   # (D_in, 2D)
    wq = t(p["wq"])                                           # (D, D)
    wi = t(p["gru_w_ih"])                                     # (D, 3D)  [r|z|n]
    wh = t(p["gru_w_hh"])                                     # (D, 3D)  [r|z|n]
    w1 = t(p["w1"])                                           # (D, 4D)
    w2 = p["w2"]                                              # (D, 4D)  native, lane-dense

    # Pack every bias / LayerNorm vector into one (12, W) array (one DMA),
    # left-aligned and zero-padded to a 128-lane multiple.
    vecs = [
        p["ln_in_g"], p["ln_in_b"],
        jnp.concatenate([p["bk"], p["bv"]]),
        p["ln_s_g"], p["ln_s_b"], p["bq"],
        p["gru_b_ih"], p["gru_b_hh"],
        p["ln_ff_g"], p["ln_ff_b"],
        p["b1"], p["b2"],
    ]
    W = max(int(v.shape[0]) for v in vecs)
    W = ((W + 127) // 128) * 128
    bias_pack = jnp.stack(
        [jnp.pad(v.astype(jnp.float32), (0, W - v.shape[0])) for v in vecs])

    # Flatten / re-tile outside the kernel (free in XLA).
    x_flat = inputs.reshape(B * N, D_in)                            # (B*N, D_in)
    slots_tiled = slots_init.reshape(grid_b, batch_tile * K, D)     # (g, Bt*K, D)

    weights = [wkv, wq, wi, wh, w1, w2, bias_pack]
    kernel = functools.partial(slot_attention_kernel,
                               num_iterations=num_iterations,
                               batch_tile=batch_tile)

    in_specs = [
        pl.BlockSpec((batch_tile * N, D_in), lambda b: (b, 0)),
        pl.BlockSpec((1, batch_tile * K, D), lambda b: (b, 0, 0)),
    ] + [pl.BlockSpec(w.shape, lambda b: (0, 0)) for w in weights]

    out = pl.pallas_call(
        kernel,
        out_shape=jax.ShapeDtypeStruct((grid_b, batch_tile * K, D), jnp.float32),
        grid_spec=pltpu.PrefetchScalarGridSpec(
            num_scalar_prefetch=0,
            grid=(grid_b,),
            in_specs=in_specs,
            out_specs=pl.BlockSpec((1, batch_tile * K, D), lambda b: (b, 0, 0)),
        ),
        compiler_params=pltpu.CompilerParams(dimension_semantics=("parallel",)),
        cost_estimate=_cost_estimate(B, N, D_in, K, D, H, num_iterations),
    )(x_flat, slots_tiled, *weights)

    return out.reshape(B, K, D)


def reference_forward(inputs, slots_init, p, num_iterations):
    """Pure-JAX reference mirroring the PyTorch module semantics."""
    def ln(x, g, b, eps=1e-5):
        mu = x.mean(-1, keepdims=True)
        var = ((x - mu) ** 2).mean(-1, keepdims=True)
        return (x - mu) / jnp.sqrt(var + eps) * g + b

    D = p["wq"].shape[0]
    x = ln(inputs, p["ln_in_g"], p["ln_in_b"])
    k = x @ p["wk"].T + p["bk"]
    v = x @ p["wv"].T + p["bv"]
    slots = slots_init
    for _ in range(num_iterations):
        slots_prev = slots
        q = (ln(slots, p["ln_s_g"], p["ln_s_b"]) @ p["wq"].T + p["bq"]) * D ** -0.5
        logits = jnp.einsum('bid,bjd->bij', k, q)
        attn = jax.nn.softmax(logits, axis=-1) + 1e-8
        attn_norm = attn / attn.sum(axis=1, keepdims=True)
        updates = jnp.einsum('bnd,bnk->bkd', v, attn_norm)
        gi = updates @ p["gru_w_ih"].T + p["gru_b_ih"]
        gh = slots_prev @ p["gru_w_hh"].T + p["gru_b_hh"]
        i_r, i_z, i_n = jnp.split(gi, 3, axis=-1)
        h_r, h_z, h_n = jnp.split(gh, 3, axis=-1)
        r = jax.nn.sigmoid(i_r + h_r)
        z = jax.nn.sigmoid(i_z + h_z)
        n = jnp.tanh(i_n + r * h_n)
        slots = (1.0 - z) * n + z * slots_prev
        sf = ln(slots, p["ln_ff_g"], p["ln_ff_b"])
        slots = slots + jax.nn.relu(sf @ p["w1"].T + p["b1"]) @ p["w2"].T + p["b2"]
    return slots


def init_params(key, in_dim, slot_dim):
    ks = jax.random.split(key, 16)
    norm = lambda k, shape, s: (jax.random.normal(k, shape, jnp.float32) * s)
    D, H = slot_dim, 4 * slot_dim
    return {
        "slots_mu": norm(ks[0], (1, 1, D), 1.0),
        "slots_sigma": norm(ks[1], (1, 1, D), 0.1),
        "wq": norm(ks[2], (D, D), D ** -0.5), "bq": jnp.zeros((D,), jnp.float32),
        "wk": norm(ks[3], (D, in_dim), in_dim ** -0.5), "bk": jnp.zeros((D,), jnp.float32),
        "wv": norm(ks[4], (D, in_dim), in_dim ** -0.5), "bv": jnp.zeros((D,), jnp.float32),
        "gru_w_ih": norm(ks[5], (3 * D, D), D ** -0.5),
        "gru_w_hh": norm(ks[6], (3 * D, D), D ** -0.5),
        "gru_b_ih": norm(ks[7], (3 * D,), 0.05),
        "gru_b_hh": norm(ks[8], (3 * D,), 0.05),
        "w1": norm(ks[9], (H, D), D ** -0.5), "b1": jnp.zeros((H,), jnp.float32),
        "w2": norm(ks[10], (D, H), H ** -0.5), "b2": jnp.zeros((D,), jnp.float32),
        "ln_in_g": jnp.ones((in_dim,), jnp.float32), "ln_in_b": jnp.zeros((in_dim,), jnp.float32),
        "ln_s_g": jnp.ones((D,), jnp.float32), "ln_s_b": jnp.zeros((D,), jnp.float32),
        "ln_ff_g": jnp.ones((D,), jnp.float32), "ln_ff_b": jnp.zeros((D,), jnp.float32),
    }


if __name__ == "__main__":
    B, N, IN_DIM = 2, 16, 64
    NUM_SLOTS, SLOT_DIM, NUM_ITERS = 6, 32, 3

    root = jax.random.PRNGKey(0)
    k_param, k_x, k_noise = jax.random.split(root, 3)

    params = init_params(k_param, IN_DIM, SLOT_DIM)
    inputs = jax.random.normal(k_x, (B, N, IN_DIM), jnp.float32)

    # slots = mu + sigma * randn(B, K, D)   (deterministic noise, same as module)
    # TODO(synk): torch.randn slot initialization is sampled outside the kernel.
    noise = jax.random.normal(k_noise, (B, NUM_SLOTS, SLOT_DIM), jnp.float32)
    slots_init = params["slots_mu"] + params["slots_sigma"] * noise

    out = slot_attention_forward(inputs, slots_init, params, NUM_ITERS)
    out = jax.block_until_ready(out)

    ref = reference_forward(inputs, slots_init, params, NUM_ITERS)
    ref = jax.block_until_ready(ref)

    assert out.shape == (B, NUM_SLOTS, SLOT_DIM)
    max_err = float(jnp.max(jnp.abs(out - ref)))
    assert max_err < 1e-2, f"max abs error vs reference too large: {max_err}"

    print("KERNEL_OK")
</pallas_src>

<mosaic_0001>
module attributes {stable_mosaic.version = 11 : i64} {
  func.func @slot_attention_kernel(%arg0: i32, %arg1: memref<16x64xf32, #tpu.memory_space<vmem>>, %arg2: memref<1x6x32xf32, #tpu.memory_space<vmem>>, %arg3: memref<64x64xf32, #tpu.memory_space<vmem>>, %arg4: memref<32x32xf32, #tpu.memory_space<vmem>>, %arg5: memref<32x96xf32, #tpu.memory_space<vmem>>, %arg6: memref<32x96xf32, #tpu.memory_space<vmem>>, %arg7: memref<32x128xf32, #tpu.memory_space<vmem>>, %arg8: memref<32x128xf32, #tpu.memory_space<vmem>>, %arg9: memref<12x128xf32, #tpu.memory_space<vmem>>, %arg10: memref<1x6x32xf32, #tpu.memory_space<vmem>>) attributes {dimension_semantics = [#tpu.dimension_semantics<parallel>], iteration_bounds = array<i64: 2>, scalar_prefetch = 0 : i64, scratch_operands = 0 : i64, tpu.core_type = #tpu.core_type<tc>, window_params = [{transform_indices = @transform_0, window_bounds = array<i64: 16, 64>}, {transform_indices = @transform_1, window_bounds = array<i64: 1, 6, 32>}, {pipeline_mode = #tpu.pipeline_mode<synchronous>, transform_indices = @transform_2, window_bounds = array<i64: 64, 64>}, {pipeline_mode = #tpu.pipeline_mode<synchronous>, transform_indices = @transform_3, window_bounds = array<i64: 32, 32>}, {pipeline_mode = #tpu.pipeline_mode<synchronous>, transform_indices = @transform_4, window_bounds = array<i64: 32, 96>}, {pipeline_mode = #tpu.pipeline_mode<synchronous>, transform_indices = @transform_5, window_bounds = array<i64: 32, 96>}, {pipeline_mode = #tpu.pipeline_mode<synchronous>, transform_indices = @transform_6, window_bounds = array<i64: 32, 128>}, {pipeline_mode = #tpu.pipeline_mode<synchronous>, transform_indices = @transform_7, window_bounds = array<i64: 32, 128>}, {pipeline_mode = #tpu.pipeline_mode<synchronous>, transform_indices = @transform_8, window_bounds = array<i64: 12, 128>}, {transform_indices = @transform_9, window_bounds = array<i64: 1, 6, 32>}]} {
    %c0 = arith.constant 0 : index
    %c0_0 = arith.constant 0 : index
    %0 = vector.load %arg1[%c0, %c0_0] : memref<16x64xf32, #tpu.memory_space<vmem>>, vector<16x64xf32>
    %c0_1 = arith.constant 0 : index
    %c0_2 = arith.constant 0 : index
    %1 = vector.load %arg9[%c0_1, %c0_2] : memref<12x128xf32, #tpu.memory_space<vmem>>, vector<1x64xf32>
    %c1 = arith.constant 1 : index
    %c0_3 = arith.constant 0 : index
    %2 = vector.load %arg9[%c1, %c0_3] : memref<12x128xf32, #tpu.memory_space<vmem>>, vector<1x64xf32>
    %cst = arith.constant dense<0.000000e+00> : vector<16xf32>
    %3 = vector.multi_reduction <add>, %0, %cst [1] : vector<16x64xf32> to vector<16xf32>
    %4 = vector.shape_cast %3 : vector<16xf32> to vector<16x1xf32>
    %cst_4 = arith.constant 6.400000e+01 : f32
    %5 = vector.broadcast %cst_4 : f32 to vector<16x1xf32>
    %6 = arith.divf %4, %5 : vector<16x1xf32>
    %7 = vector.broadcast %6 : vector<16x1xf32> to vector<16x64xf32>
    %8 = arith.subf %0, %7 : vector<16x64xf32>
    %9 = arith.mulf %8, %8 : vector<16x64xf32>
    %cst_5 = arith.constant dense<0.000000e+00> : vector<16xf32>
    %10 = vector.multi_reduction <add>, %9, %cst_5 [1] : vector<16x64xf32> to vector<16xf32>
    %11 = vector.shape_cast %10 : vector<16xf32> to vector<16x1xf32>
    %cst_6 = arith.constant 6.400000e+01 : f32
    %12 = vector.broadcast %cst_6 : f32 to vector<16x1xf32>
    %13 = arith.divf %11, %12 : vector<16x1xf32>
    %14 = vector.broadcast %6 : vector<16x1xf32> to vector<16x64xf32>
    %15 = arith.subf %0, %14 : vector<16x64xf32>
    %cst_7 = arith.constant 9.99999974E-6 : f32
    %16 = vector.broadcast %cst_7 : f32 to vector<16x1xf32>
    %17 = arith.addf %13, %16 : vector<16x1xf32>
    %18 = math.rsqrt %17 : vector<16x1xf32>
    %19 = vector.broadcast %18 : vector<16x1xf32> to vector<16x64xf32>
    %20 = arith.mulf %15, %19 : vector<16x64xf32>
    %21 = vector.broadcast %1 : vector<1x64xf32> to vector<16x64xf32>
    %22 = arith.mulf %20, %21 : vector<16x64xf32>
    %23 = vector.broadcast %2 : vector<1x64xf32> to vector<16x64xf32>
    %24 = arith.addf %22, %23 : vector<16x64xf32>
    %c0_8 = arith.constant 0 : index
    %c0_9 = arith.constant 0 : index
    %25 = vector.load %arg3[%c0_8, %c0_9] : memref<64x64xf32, #tpu.memory_space<vmem>>, vector<64x64xf32>
    %cst_10 = arith.constant dense<0.000000e+00> : vector<16x64xf32>
    %26 = tpu.matmul %24, %25, %cst_10 {dimension_numbers = #tpu.dot_dimension_numbers<[1], [0], [0], [1], [0, 0, 1, 1], [], []>} : vector<16x64xf32>, vector<64x64xf32>, vector<16x64xf32> -> vector<16x64xf32>
    %c2 = arith.constant 2 : index
    %c0_11 = arith.constant 0 : index
    %27 = vector.load %arg9[%c2, %c0_11] : memref<12x128xf32, #tpu.memory_space<vmem>>, vector<1x64xf32>
    %28 = vector.broadcast %27 : vector<1x64xf32> to vector<16x64xf32>
    %29 = arith.addf %26, %28 : vector<16x64xf32>
    %30 = vector.extract_strided_slice %29 {offsets = [0, 0], sizes = [16, 32], strides = [1, 1]} : vector<16x64xf32> to vector<16x32xf32>
    %31 = vector.extract_strided_slice %29 {offsets = [0, 32], sizes = [16, 32], strides = [1, 1]} : vector<16x64xf32> to vector<16x32xf32>
    %c0_12 = arith.constant 0 : index
    %c0_13 = arith.constant 0 : index
    %c0_14 = arith.constant 0 : index
    %32 = vector.load %arg2[%c0_12, %c0_13, %c0_14] : memref<1x6x32xf32, #tpu.memory_space<vmem>>, vector<1x6x32xf32>
    %33 = vector.shape_cast %32 : vector<1x6x32xf32> to vector<6x32xf32>
    %c3 = arith.constant 3 : index
    %c0_15 = arith.constant 0 : index
    %34 = vector.load %arg9[%c3, %c0_15] : memref<12x128xf32, #tpu.memory_space<vmem>>, vector<1x32xf32>
    %c4 = arith.constant 4 : index
    %c0_16 = arith.constant 0 : index
    %35 = vector.load %arg9[%c4, %c0_16] : memref<12x128xf32, #tpu.memory_space<vmem>>, vector<1x32xf32>
    %cst_17 = arith.constant dense<0.000000e+00> : vector<6xf32>
    %36 = vector.multi_reduction <add>, %33, %cst_17 [1] : vector<6x32xf32> to vector<6xf32>
    %37 = vector.shape_cast %36 : vector<6xf32> to vector<6x1xf32>
    %cst_18 = arith.constant 3.200000e+01 : f32
    %38 = vector.broadcast %cst_18 : f32 to vector<6x1xf32>
    %39 = arith.divf %37, %38 : vector<6x1xf32>
    %40 = vector.broadcast %39 : vector<6x1xf32> to vector<6x32xf32>
    %41 = arith.subf %33, %40 : vector<6x32xf32>
    %42 = arith.mulf %41, %41 : vector<6x32xf32>
    %cst_19 = arith.constant dense<0.000000e+00> : vector<6xf32>
    %43 = vector.multi_reduction <add>, %42, %cst_19 [1] : vector<6x32xf32> to vector<6xf32>
    %44 = vector.shape_cast %43 : vector<6xf32> to vector<6x1xf32>
    %cst_20 = arith.constant 3.200000e+01 : f32
    %45 = vector.broadcast %cst_20 : f32 to vector<6x1xf32>
    %46 = arith.divf %44, %45 : vector<6x1xf32>
    %47 = vector.broadcast %39 : vector<6x1xf32> to vector<6x32xf32>
    %48 = arith.subf %33, %47 : vector<6x32xf32>
    %cst_21 = arith.constant 9.99999974E-6 : f32
    %49 = vector.broadcast %cst_21 : f32 to vector<6x1xf32>
    %50 = arith.addf %46, %49 : vector<6x1xf32>
    %51 = math.rsqrt %50 : vector<6x1xf32>
    %52 = vector.broadcast %51 : vector<6x1xf32> to vector<6x32xf32>
    %53 = arith.mulf %48, %52 : vector<6x32xf32>
    %54 = vector.broadcast %34 : vector<1x32xf32> to vector<6x32xf32>
    %55 = arith.mulf %53, %54 : vector<6x32xf32>
    %56 = vector.broadcast %35 : vector<1x32xf32> to vector<6x32xf32>
    %57 = arith.addf %55, %56 : vector<6x32xf32>
    %c0_22 = arith.constant 0 : index
    %c0_23 = arith.constant 0 : index
    %58 = vector.load %arg4[%c0_22, %c0_23] : memref<32x32xf32, #tpu.memory_space<vmem>>, vector<32x32xf32>
    %cst_24 = arith.constant dense<0.000000e+00> : vector<6x32xf32>
    %59 = tpu.matmul %57, %58, %cst_24 {dimension_numbers = #tpu.dot_dimension_numbers<[1], [0], [0], [1], [0, 0, 1, 1], [], []>} : vector<6x32xf32>, vector<32x32xf32>, vector<6x32xf32> -> vector<6x32xf32>
    %c5 = arith.constant 5 : index
    %c0_25 = arith.constant 0 : index
    %60 = vector.load %arg9[%c5, %c0_25] : memref<12x128xf32, #tpu.memory_space<vmem>>, vector<1x32xf32>
    %61 = vector.broadcast %60 : vector<1x32xf32> to vector<6x32xf32>
    %62 = arith.addf %59, %61 : vector<6x32xf32>
    %cst_26 = arith.constant 0.176776692 : f32
    %63 = vector.broadcast %cst_26 : f32 to vector<6x32xf32>
    %64 = arith.mulf %62, %63 : vector<6x32xf32>
    %cst_27 = arith.constant dense<0.000000e+00> : vector<6x16xf32>
    %65 = tpu.matmul %64, %30, %cst_27 {dimension_numbers = #tpu.dot_dimension_numbers<[1], [1], [0], [0], [0, 0, 1, 0], [], []>} : vector<6x32xf32>, vector<16x32xf32>, vector<6x16xf32> -> vector<6x16xf32>
    %cst_28 = arith.constant dense<0xFF800000> : vector<16xf32>
    %66 = vector.multi_reduction <maximumf>, %65, %cst_28 [0] : vector<6x16xf32> to vector<16xf32>
    %67 = vector.shape_cast %66 : vector<16xf32> to vector<1x16xf32>
    %68 = vector.broadcast %67 : vector<1x16xf32> to vector<6x16xf32>
    %69 = arith.subf %65, %68 : vector<6x16xf32>
    %70 = math.exp %69 : vector<6x16xf32>
    %cst_29 = arith.constant dense<0.000000e+00> : vector<16xf32>
    %71 = vector.multi_reduction <add>, %70, %cst_29 [0] : vector<6x16xf32> to vector<16xf32>
    %72 = vector.shape_cast %71 : vector<16xf32> to vector<1x16xf32>
    %73 = tpu.reciprocal %72 {approx = true} : vector<1x16xf32> -> vector<1x16xf32>
    %74 = vector.broadcast %73 : vector<1x16xf32> to vector<6x16xf32>
    %75 = arith.mulf %70, %74 : vector<6x16xf32>
    %cst_30 = arith.constant 9.99999993E-9 : f32
    %76 = vector.broadcast %cst_30 : f32 to vector<6x16xf32>
    %77 = arith.addf %75, %76 : vector<6x16xf32>
    %cst_31 = arith.constant dense<0.000000e+00> : vector<6xf32>
    %78 = vector.multi_reduction <add>, %77, %cst_31 [1] : vector<6x16xf32> to vector<6xf32>
    %79 = vector.shape_cast %78 : vector<6xf32> to vector<6x1xf32>
    %cst_32 = arith.constant 1.000000e+00 : f32
    %80 = vector.broadcast %cst_32 : f32 to vector<6x1xf32>
    %81 = arith.divf %80, %79 : vector<6x1xf32>
    %82 = vector.broadcast %81 : vector<6x1xf32> to vector<6x16xf32>
    %83 = arith.mulf %77, %82 : vector<6x16xf32>
    %cst_33 = arith.constant dense<0.000000e+00> : vector<6x32xf32>
    %84 = tpu.matmul %83, %31, %cst_33 {dimension_numbers = #tpu.dot_dimension_numbers<[1], [0], [0], [1], [0, 0, 1, 1], [], []>} : vector<6x16xf32>, vector<16x32xf32>, vector<6x32xf32> -> vector<6x32xf32>
    %c0_34 = arith.constant 0 : index
    %c0_35 = arith.constant 0 : index
    %85 = vector.load %arg5[%c0_34, %c0_35] : memref<32x96xf32, #tpu.memory_space<vmem>>, vector<32x96xf32>
    %cst_36 = arith.constant dense<0.000000e+00> : vector<6x96xf32>
    %86 = tpu.matmul %84, %85, %cst_36 {dimension_numbers = #tpu.dot_dimension_numbers<[1], [0], [0], [1], [0, 0, 1, 1], [], []>} : vector<6x32xf32>, vector<32x96xf32>, vector<6x96xf32> -> vector<6x96xf32>
    %c6 = arith.constant 6 : index
    %c0_37 = arith.constant 0 : index
    %87 = vector.load %arg9[%c6, %c0_37] : memref<12x128xf32, #tpu.memory_space<vmem>>, vector<1x96xf32>
    %88 = vector.broadcast %87 : vector<1x96xf32> to vector<6x96xf32>
    %89 = arith.addf %86, %88 : vector<6x96xf32>
    %c0_38 = arith.constant 0 : index
    %c0_39 = arith.constant 0 : index
    %90 = vector.load %arg6[%c0_38, %c0_39] : memref<32x96xf32, #tpu.memory_space<vmem>>, vector<32x96xf32>
    %cst_40 = arith.constant dense<0.000000e+00> : vector<6x96xf32>
    %91 = tpu.matmul %33, %90, %cst_40 {dimension_numbers = #tpu.dot_dimension_numbers<[1], [0], [0], [1], [0, 0, 1, 1], [], []>} : vector<6x32xf32>, vector<32x96xf32>, vector<6x96xf32> -> vector<6x96xf32>
    %c7 = arith.constant 7 : index
    %c0_41 = arith.constant 0 : index
    %92 = vector.load %arg9[%c7, %c0_41] : memref<12x128xf32, #tpu.memory_space<vmem>>, vector<1x96xf32>
    %93 = vector.broadcast %92 : vector<1x96xf32> to vector<6x96xf32>
    %94 = arith.addf %91, %93 : vector<6x96xf32>
    %95 = vector.extract_strided_slice %89 {offsets = [0, 0], sizes = [6, 32], strides = [1, 1]} : vector<6x96xf32> to vector<6x32xf32>
    %96 = vector.extract_strided_slice %94 {offsets = [0, 0], sizes = [6, 32], strides = [1, 1]} : vector<6x96xf32> to vector<6x32xf32>
    %97 = arith.addf %95, %96 : vector<6x32xf32>
    %98 = arith.negf %97 : vector<6x32xf32>
    %99 = math.exp %98 : vector<6x32xf32>
    %cst_42 = arith.constant 1.000000e+00 : f32
    %100 = vector.broadcast %cst_42 : f32 to vector<6x32xf32>
    %101 = arith.addf %100, %99 : vector<6x32xf32>
    %102 = arith.divf %100, %101 : vector<6x32xf32>
    %103 = vector.extract_strided_slice %89 {offsets = [0, 32], sizes = [6, 32], strides = [1, 1]} : vector<6x96xf32> to vector<6x32xf32>
    %104 = vector.extract_strided_slice %94 {offsets = [0, 32], sizes = [6, 32], strides = [1, 1]} : vector<6x96xf32> to vector<6x32xf32>
    %105 = arith.addf %103, %104 : vector<6x32xf32>
    %106 = arith.negf %105 : vector<6x32xf32>
    %107 = math.exp %106 : vector<6x32xf32>
    %cst_43 = arith.constant 1.000000e+00 : f32
    %108 = vector.broadcast %cst_43 : f32 to vector<6x32xf32>
    %109 = arith.addf %108, %107 : vector<6x32xf32>
    %110 = arith.divf %108, %109 : vector<6x32xf32>
    %111 = vector.extract_strided_slice %89 {offsets = [0, 64], sizes = [6, 32], strides = [1, 1]} : vector<6x96xf32> to vector<6x32xf32>
    %112 = vector.extract_strided_slice %94 {offsets = [0, 64], sizes = [6, 32], strides = [1, 1]} : vector<6x96xf32> to vector<6x32xf32>
    %113 = arith.mulf %102, %112 : vector<6x32xf32>
    %114 = arith.addf %111, %113 : vector<6x32xf32>
    %115 = math.tanh %114 : vector<6x32xf32>
    %cst_44 = arith.constant 1.000000e+00 : f32
    %116 = vector.broadcast %cst_44 : f32 to vector<6x32xf32>
    %117 = arith.subf %116, %110 : vector<6x32xf32>
    %118 = arith.mulf %117, %115 : vector<6x32xf32>
    %119 = arith.mulf %110, %33 : vector<6x32xf32>
    %120 = arith.addf %118, %119 : vector<6x32xf32>
    %c8 = arith.constant 8 : index
    %c0_45 = arith.constant 0 : index
    %121 = vector.load %arg9[%c8, %c0_45] : memref<12x128xf32, #tpu.memory_space<vmem>>, vector<1x32xf32>
    %c9 = arith.constant 9 : index
    %c0_46 = arith.constant 0 : index
    %122 = vector.load %arg9[%c9, %c0_46] : memref<12x128xf32, #tpu.memory_space<vmem>>, vector<1x32xf32>
    %cst_47 = arith.constant dense<0.000000e+00> : vector<6xf32>
    %123 = vector.multi_reduction <add>, %120, %cst_47 [1] : vector<6x32xf32> to vector<6xf32>
    %124 = vector.shape_cast %123 : vector<6xf32> to vector<6x1xf32>
    %cst_48 = arith.constant 3.200000e+01 : f32
    %125 = vector.broadcast %cst_48 : f32 to vector<6x1xf32>
    %126 = arith.divf %124, %125 : vector<6x1xf32>
    %127 = vector.broadcast %126 : vector<6x1xf32> to vector<6x32xf32>
    %128 = arith.subf %120, %127 : vector<6x32xf32>
    %129 = arith.mulf %128, %128 : vector<6x32xf32>
    %cst_49 = arith.constant dense<0.000000e+00> : vector<6xf32>
    %130 = vector.multi_reduction <add>, %129, %cst_49 [1] : vector<6x32xf32> to vector<6xf32>
    %131 = vector.shape_cast %130 : vector<6xf32> to vector<6x1xf32>
    %cst_50 = arith.constant 3.200000e+01 : f32
    %132 = vector.broadcast %cst_50 : f32 to vector<6x1xf32>
    %133 = arith.divf %131, %132 : vector<6x1xf32>
    %134 = vector.broadcast %126 : vector<6x1xf32> to vector<6x32xf32>
    %135 = arith.subf %120, %134 : vector<6x32xf32>
    %cst_51 = arith.constant 9.99999974E-6 : f32
    %136 = vector.broadcast %cst_51 : f32 to vector<6x1xf32>
    %137 = arith.addf %133, %136 : vector<6x1xf32>
    %138 = math.rsqrt %137 : vector<6x1xf32>
    %139 = vector.broadcast %138 : vector<6x1xf32> to vector<6x32xf32>
    %140 = arith.mulf %135, %139 : vector<6x32xf32>
    %141 = vector.broadcast %121 : vector<1x32xf32> to vector<6x32xf32>
    %142 = arith.mulf %140, %141 : vector<6x32xf32>
    %143 = vector.broadcast %122 : vector<1x32xf32> to vector<6x32xf32>
    %144 = arith.addf %142, %143 : vector<6x32xf32>
    %c0_52 = arith.constant 0 : index
    %c0_53 = arith.constant 0 : index
    %145 = vector.load %arg7[%c0_52, %c0_53] : memref<32x128xf32, #tpu.memory_space<vmem>>, vector<32x128xf32>
    %cst_54 = arith.constant dense<0.000000e+00> : vector<6x128xf32>
    %146 = tpu.matmul %144, %145, %cst_54 {dimension_numbers = #tpu.dot_dimension_numbers<[1], [0], [0], [1], [0, 0, 1, 1], [], []>} : vector<6x32xf32>, vector<32x128xf32>, vector<6x128xf32> -> vector<6x128xf32>
    %c10 = arith.constant 10 : index
    %c0_55 = arith.constant 0 : index
    %147 = vector.load %arg9[%c10, %c0_55] : memref<12x128xf32, #tpu.memory_space<vmem>>, vector<1x128xf32>
    %148 = vector.broadcast %147 : vector<1x128xf32> to vector<6x128xf32>
    %149 = arith.addf %146, %148 : vector<6x128xf32>
    %cst_56 = arith.constant 0.000000e+00 : f32
    %150 = vector.broadcast %cst_56 : f32 to vector<6x128xf32>
    %151 = arith.maximumf %149, %150 : vector<6x128xf32>
    %c0_57 = arith.constant 0 : index
    %c0_58 = arith.constant 0 : index
    %152 = vector.load %arg8[%c0_57, %c0_58] : memref<32x128xf32, #tpu.memory_space<vmem>>, vector<32x128xf32>
    %cst_59 = arith.constant dense<0.000000e+00> : vector<6x32xf32>
    %153 = tpu.matmul %151, %152, %cst_59 {dimension_numbers = #tpu.dot_dimension_numbers<[1], [1], [0], [0], [0, 0, 1, 0], [], []>} : vector<6x128xf32>, vector<32x128xf32>, vector<6x32xf32> -> vector<6x32xf32>
    %154 = arith.addf %120, %153 : vector<6x32xf32>
    %c11 = arith.constant 11 : index
    %c0_60 = arith.constant 0 : index
    %155 = vector.load %arg9[%c11, %c0_60] : memref<12x128xf32, #tpu.memory_space<vmem>>, vector<1x32xf32>
    %156 = vector.broadcast %155 : vector<1x32xf32> to vector<6x32xf32>
    %157 = arith.addf %154, %156 : vector<6x32xf32>
    %c3_61 = arith.constant 3 : index
    %c0_62 = arith.constant 0 : index
    %158 = vector.load %arg9[%c3_61, %c0_62] : memref<12x128xf32, #tpu.memory_space<vmem>>, vector<1x32xf32>
    %c4_63 = arith.constant 4 : index
    %c0_64 = arith.constant 0 : index
    %159 = vector.load %arg9[%c4_63, %c0_64] : memref<12x128xf32, #tpu.memory_space<vmem>>, vector<1x32xf32>
    %cst_65 = arith.constant dense<0.000000e+00> : vector<6xf32>
    %160 = vector.multi_reduction <add>, %157, %cst_65 [1] : vector<6x32xf32> to vector<6xf32>
    %161 = vector.shape_cast %160 : vector<6xf32> to vector<6x1xf32>
    %cst_66 = arith.constant 3.200000e+01 : f32
    %162 = vector.broadcast %cst_66 : f32 to vector<6x1xf32>
    %163 = arith.divf %161, %162 : vector<6x1xf32>
    %164 = vector.broadcast %163 : vector<6x1xf32> to vector<6x32xf32>
    %165 = arith.subf %157, %164 : vector<6x32xf32>
    %166 = arith.mulf %165, %165 : vector<6x32xf32>
    %cst_67 = arith.constant dense<0.000000e+00> : vector<6xf32>
    %167 = vector.multi_reduction <add>, %166, %cst_67 [1] : vector<6x32xf32> to vector<6xf32>
    %168 = vector.shape_cast %167 : vector<6xf32> to vector<6x1xf32>
    %cst_68 = arith.constant 3.200000e+01 : f32
    %169 = vector.broadcast %cst_68 : f32 to vector<6x1xf32>
    %170 = arith.divf %168, %169 : vector<6x1xf32>
    %171 = vector.broadcast %163 : vector<6x1xf32> to vector<6x32xf32>
    %172 = arith.subf %157, %171 : vector<6x32xf32>
    %cst_69 = arith.constant 9.99999974E-6 : f32
    %173 = vector.broadcast %cst_69 : f32 to vector<6x1xf32>
    %174 = arith.addf %170, %173 : vector<6x1xf32>
    %175 = math.rsqrt %174 : vector<6x1xf32>
    %176 = vector.broadcast %175 : vector<6x1xf32> to vector<6x32xf32>
    %177 = arith.mulf %172, %176 : vector<6x32xf32>
    %178 = vector.broadcast %158 : vector<1x32xf32> to vector<6x32xf32>
    %179 = arith.mulf %177, %178 : vector<6x32xf32>
    %180 = vector.broadcast %159 : vector<1x32xf32> to vector<6x32xf32>
    %181 = arith.addf %179, %180 : vector<6x32xf32>
    %c0_70 = arith.constant 0 : index
    %c0_71 = arith.constant 0 : index
    %182 = vector.load %arg4[%c0_70, %c0_71] : memref<32x32xf32, #tpu.memory_space<vmem>>, vector<32x32xf32>
    %cst_72 = arith.constant dense<0.000000e+00> : vector<6x32xf32>
    %183 = tpu.matmul %181, %182, %cst_72 {dimension_numbers = #tpu.dot_dimension_numbers<[1], [0], [0], [1], [0, 0, 1, 1], [], []>} : vector<6x32xf32>, vector<32x32xf32>, vector<6x32xf32> -> vector<6x32xf32>
    %c5_73 = arith.constant 5 : index
    %c0_74 = arith.constant 0 : index
    %184 = vector.load %arg9[%c5_73, %c0_74] : memref<12x128xf32, #tpu.memory_space<vmem>>, vector<1x32xf32>
    %185 = vector.broadcast %184 : vector<1x32xf32> to vector<6x32xf32>
    %186 = arith.addf %183, %185 : vector<6x32xf32>
    %cst_75 = arith.constant 0.176776692 : f32
    %187 = vector.broadcast %cst_75 : f32 to vector<6x32xf32>
    %188 = arith.mulf %186, %187 : vector<6x32xf32>
    %cst_76 = arith.constant dense<0.000000e+00> : vector<6x16xf32>
    %189 = tpu.matmul %188, %30, %cst_76 {dimension_numbers = #tpu.dot_dimension_numbers<[1], [1], [0], [0], [0, 0, 1, 0], [], []>} : vector<6x32xf32>, vector<16x32xf32>, vector<6x16xf32> -> vector<6x16xf32>
    %cst_77 = arith.constant dense<0xFF800000> : vector<16xf32>
    %190 = vector.multi_reduction <maximumf>, %189, %cst_77 [0] : vector<6x16xf32> to vector<16xf32>
    %191 = vector.shape_cast %190 : vector<16xf32> to vector<1x16xf32>
    %192 = vector.broadcast %191 : vector<1x16xf32> to vector<6x16xf32>
    %193 = arith.subf %189, %192 : vector<6x16xf32>
    %194 = math.exp %193 : vector<6x16xf32>
    %cst_78 = arith.constant dense<0.000000e+00> : vector<16xf32>
    %195 = vector.multi_reduction <add>, %194, %cst_78 [0] : vector<6x16xf32> to vector<16xf32>
    %196 = vector.shape_cast %195 : vector<16xf32> to vector<1x16xf32>
    %197 = tpu.reciprocal %196 {approx = true} : vector<1x16xf32> -> vector<1x16xf32>
    %198 = vector.broadcast %197 : vector<1x16xf32> to vector<6x16xf32>
    %199 = arith.mulf %194, %198 : vector<6x16xf32>
    %cst_79 = arith.constant 9.99999993E-9 : f32
    %200 = vector.broadcast %cst_79 : f32 to vector<6x16xf32>
    %201 = arith.addf %199, %200 : vector<6x16xf32>
    %cst_80 = arith.constant dense<0.000000e+00> : vector<6xf32>
    %202 = vector.multi_reduction <add>, %201, %cst_80 [1] : vector<6x16xf32> to vector<6xf32>
    %203 = vector.shape_cast %202 : vector<6xf32> to vector<6x1xf32>
    %cst_81 = arith.constant 1.000000e+00 : f32
    %204 = vector.broadcast %cst_81 : f32 to vector<6x1xf32>
    %205 = arith.divf %204, %203 : vector<6x1xf32>
    %206 = vector.broadcast %205 : vector<6x1xf32> to vector<6x16xf32>
    %207 = arith.mulf %201, %206 : vector<6x16xf32>
    %cst_82 = arith.constant dense<0.000000e+00> : vector<6x32xf32>
    %208 = tpu.matmul %207, %31, %cst_82 {dimension_numbers = #tpu.dot_dimension_numbers<[1], [0], [0], [1], [0, 0, 1, 1], [], []>} : vector<6x16xf32>, vector<16x32xf32>, vector<6x32xf32> -> vector<6x32xf32>
    %c0_83 = arith.constant 0 : index
    %c0_84 = arith.constant 0 : index
    %209 = vector.load %arg5[%c0_83, %c0_84] : memref<32x96xf32, #tpu.memory_space<vmem>>, vector<32x96xf32>
    %cst_85 = arith.constant dense<0.000000e+00> : vector<6x96xf32>
    %210 = tpu.matmul %208, %209, %cst_85 {dimension_numbers = #tpu.dot_dimension_numbers<[1], [0], [0], [1], [0, 0, 1, 1], [], []>} : vector<6x32xf32>, vector<32x96xf32>, vector<6x96xf32> -> vector<6x96xf32>
    %c6_86 = arith.constant 6 : index
    %c0_87 = arith.constant 0 : index
    %211 = vector.load %arg9[%c6_86, %c0_87] : memref<12x128xf32, #tpu.memory_space<vmem>>, vector<1x96xf32>
    %212 = vector.broadcast %211 : vector<1x96xf32> to vector<6x96xf32>
    %213 = arith.addf %210, %212 : vector<6x96xf32>
    %c0_88 = arith.constant 0 : index
    %c0_89 = arith.constant 0 : index
    %214 = vector.load %arg6[%c0_88, %c0_89] : memref<32x96xf32, #tpu.memory_space<vmem>>, vector<32x96xf32>
    %cst_90 = arith.constant dense<0.000000e+00> : vector<6x96xf32>
    %215 = tpu.matmul %157, %214, %cst_90 {dimension_numbers = #tpu.dot_dimension_numbers<[1], [0], [0], [1], [0, 0, 1, 1], [], []>} : vector<6x32xf32>, vector<32x96xf32>, vector<6x96xf32> -> vector<6x96xf32>
    %c7_91 = arith.constant 7 : index
    %c0_92 = arith.constant 0 : index
    %216 = vector.load %arg9[%c7_91, %c0_92] : memref<12x128xf32, #tpu.memory_space<vmem>>, vector<1x96xf32>
    %217 = vector.broadcast %216 : vector<1x96xf32> to vector<6x96xf32>
    %218 = arith.addf %215, %217 : vector<6x96xf32>
    %219 = vector.extract_strided_slice %213 {offsets = [0, 0], sizes = [6, 32], strides = [1, 1]} : vector<6x96xf32> to vector<6x32xf32>
    %220 = vector.extract_strided_slice %218 {offsets = [0, 0], sizes = [6, 32], strides = [1, 1]} : vector<6x96xf32> to vector<6x32xf32>
    %221 = arith.addf %219, %220 : vector<6x32xf32>
    %222 = arith.negf %221 : vector<6x32xf32>
    %223 = math.exp %222 : vector<6x32xf32>
    %cst_93 = arith.constant 1.000000e+00 : f32
    %224 = vector.broadcast %cst_93 : f32 to vector<6x32xf32>
    %225 = arith.addf %224, %223 : vector<6x32xf32>
    %226 = arith.divf %224, %225 : vector<6x32xf32>
    %227 = vector.extract_strided_slice %213 {offsets = [0, 32], sizes = [6, 32], strides = [1, 1]} : vector<6x96xf32> to vector<6x32xf32>
    %228 = vector.extract_strided_slice %218 {offsets = [0, 32], sizes = [6, 32], strides = [1, 1]} : vector<6x96xf32> to vector<6x32xf32>
    %229 = arith.addf %227, %228 : vector<6x32xf32>
    %230 = arith.negf %229 : vector<6x32xf32>
    %231 = math.exp %230 : vector<6x32xf32>
    %cst_94 = arith.constant 1.000000e+00 : f32
    %232 = vector.broadcast %cst_94 : f32 to vector<6x32xf32>
    %233 = arith.addf %232, %231 : vector<6x32xf32>
    %234 = arith.divf %232, %233 : vector<6x32xf32>
    %235 = vector.extract_strided_slice %213 {offsets = [0, 64], sizes = [6, 32], strides = [1, 1]} : vector<6x96xf32> to vector<6x32xf32>
    %236 = vector.extract_strided_slice %218 {offsets = [0, 64], sizes = [6, 32], strides = [1, 1]} : vector<6x96xf32> to vector<6x32xf32>
    %237 = arith.mulf %226, %236 : vector<6x32xf32>
    %238 = arith.addf %235, %237 : vector<6x32xf32>
    %239 = math.tanh %238 : vector<6x32xf32>
    %cst_95 = arith.constant 1.000000e+00 : f32
    %240 = vector.broadcast %cst_95 : f32 to vector<6x32xf32>
    %241 = arith.subf %240, %234 : vector<6x32xf32>
    %242 = arith.mulf %241, %239 : vector<6x32xf32>
    %243 = arith.mulf %234, %157 : vector<6x32xf32>
    %244 = arith.addf %242, %243 : vector<6x32xf32>
    %c8_96 = arith.constant 8 : index
    %c0_97 = arith.constant 0 : index
    %245 = vector.load %arg9[%c8_96, %c0_97] : memref<12x128xf32, #tpu.memory_space<vmem>>, vector<1x32xf32>
    %c9_98 = arith.constant 9 : index
    %c0_99 = arith.constant 0 : index
    %246 = vector.load %arg9[%c9_98, %c0_99] : memref<12x128xf32, #tpu.memory_space<vmem>>, vector<1x32xf32>
    %cst_100 = arith.constant dense<0.000000e+00> : vector<6xf32>
    %247 = vector.multi_reduction <add>, %244, %cst_100 [1] : vector<6x32xf32> to vector<6xf32>
    %248 = vector.shape_cast %247 : vector<6xf32> to vector<6x1xf32>
    %cst_101 = arith.constant 3.200000e+01 : f32
    %249 = vector.broadcast %cst_101 : f32 to vector<6x1xf32>
    %250 = arith.divf %248, %249 : vector<6x1xf32>
    %251 = vector.broadcast %250 : vector<6x1xf32> to vector<6x32xf32>
    %252 = arith.subf %244, %251 : vector<6x32xf32>
    %253 = arith.mulf %252, %252 : vector<6x32xf32>
    %cst_102 = arith.constant dense<0.000000e+00> : vector<6xf32>
    %254 = vector.multi_reduction <add>, %253, %cst_102 [1] : vector<6x32xf32> to vector<6xf32>
    %255 = vector.shape_cast %254 : vector<6xf32> to vector<6x1xf32>
    %cst_103 = arith.constant 3.200000e+01 : f32
    %256 = vector.broadcast %cst_103 : f32 to vector<6x1xf32>
    %257 = arith.divf %255, %256 : vector<6x1xf32>
    %258 = vector.broadcast %250 : vector<6x1xf32> to vector<6x32xf32>
    %259 = arith.subf %244, %258 : vector<6x32xf32>
    %cst_104 = arith.constant 9.99999974E-6 : f32
    %260 = vector.broadcast %cst_104 : f32 to vector<6x1xf32>
    %261 = arith.addf %257, %260 : vector<6x1xf32>
    %262 = math.rsqrt %261 : vector<6x1xf32>
    %263 = vector.broadcast %262 : vector<6x1xf32> to vector<6x32xf32>
    %264 = arith.mulf %259, %263 : vector<6x32xf32>
    %265 = vector.broadcast %245 : vector<1x32xf32> to vector<6x32xf32>
    %266 = arith.mulf %264, %265 : vector<6x32xf32>
    %267 = vector.broadcast %246 : vector<1x32xf32> to vector<6x32xf32>
    %268 = arith.addf %266, %267 : vector<6x32xf32>
    %c0_105 = arith.constant 0 : index
    %c0_106 = arith.constant 0 : index
    %269 = vector.load %arg7[%c0_105, %c0_106] : memref<32x128xf32, #tpu.memory_space<vmem>>, vector<32x128xf32>
    %cst_107 = arith.constant dense<0.000000e+00> : vector<6x128xf32>
    %270 = tpu.matmul %268, %269, %cst_107 {dimension_numbers = #tpu.dot_dimension_numbers<[1], [0], [0], [1], [0, 0, 1, 1], [], []>} : vector<6x32xf32>, vector<32x128xf32>, vector<6x128xf32> -> vector<6x128xf32>
    %c10_108 = arith.constant 10 : index
    %c0_109 = arith.constant 0 : index
    %271 = vector.load %arg9[%c10_108, %c0_109] : memref<12x128xf32, #tpu.memory_space<vmem>>, vector<1x128xf32>
    %272 = vector.broadcast %271 : vector<1x128xf32> to vector<6x128xf32>
    %273 = arith.addf %270, %272 : vector<6x128xf32>
    %cst_110 = arith.constant 0.000000e+00 : f32
    %274 = vector.broadcast %cst_110 : f32 to vector<6x128xf32>
    %275 = arith.maximumf %273, %274 : vector<6x128xf32>
    %c0_111 = arith.constant 0 : index
    %c0_112 = arith.constant 0 : index
    %276 = vector.load %arg8[%c0_111, %c0_112] : memref<32x128xf32, #tpu.memory_space<vmem>>, vector<32x128xf32>
    %cst_113 = arith.constant dense<0.000000e+00> : vector<6x32xf32>
    %277 = tpu.matmul %275, %276, %cst_113 {dimension_numbers = #tpu.dot_dimension_numbers<[1], [1], [0], [0], [0, 0, 1, 0], [], []>} : vector<6x128xf32>, vector<32x128xf32>, vector<6x32xf32> -> vector<6x32xf32>
    %278 = arith.addf %244, %277 : vector<6x32xf32>
    %c11_114 = arith.constant 11 : index
    %c0_115 = arith.constant 0 : index
    %279 = vector.load %arg9[%c11_114, %c0_115] : memref<12x128xf32, #tpu.memory_space<vmem>>, vector<1x32xf32>
    %280 = vector.broadcast %279 : vector<1x32xf32> to vector<6x32xf32>
    %281 = arith.addf %278, %280 : vector<6x32xf32>
    %c3_116 = arith.constant 3 : index
    %c0_117 = arith.constant 0 : index
    %282 = vector.load %arg9[%c3_116, %c0_117] : memref<12x128xf32, #tpu.memory_space<vmem>>, vector<1x32xf32>
    %c4_118 = arith.constant 4 : index
    %c0_119 = arith.constant 0 : index
    %283 = vector.load %arg9[%c4_118, %c0_119] : memref<12x128xf32, #tpu.memory_space<vmem>>, vector<1x32xf32>
    %cst_120 = arith.constant dense<0.000000e+00> : vector<6xf32>
    %284 = vector.multi_reduction <add>, %281, %cst_120 [1] : vector<6x32xf32> to vector<6xf32>
    %285 = vector.shape_cast %284 : vector<6xf32> to vector<6x1xf32>
    %cst_121 = arith.constant 3.200000e+01 : f32
    %286 = vector.broadcast %cst_121 : f32 to vector<6x1xf32>
    %287 = arith.divf %285, %286 : vector<6x1xf32>
    %288 = vector.broadcast %287 : vector<6x1xf32> to vector<6x32xf32>
    %289 = arith.subf %281, %288 : vector<6x32xf32>
    %290 = arith.mulf %289, %289 : vector<6x32xf32>
    %cst_122 = arith.constant dense<0.000000e+00> : vector<6xf32>
    %291 = vector.multi_reduction <add>, %290, %cst_122 [1] : vector<6x32xf32> to vector<6xf32>
    %292 = vector.shape_cast %291 : vector<6xf32> to vector<6x1xf32>
    %cst_123 = arith.constant 3.200000e+01 : f32
    %293 = vector.broadcast %cst_123 : f32 to vector<6x1xf32>
    %294 = arith.divf %292, %293 : vector<6x1xf32>
    %295 = vector.broadcast %287 : vector<6x1xf32> to vector<6x32xf32>
    %296 = arith.subf %281, %295 : vector<6x32xf32>
    %cst_124 = arith.constant 9.99999974E-6 : f32
    %297 = vector.broadcast %cst_124 : f32 to vector<6x1xf32>
    %298 = arith.addf %294, %297 : vector<6x1xf32>
    %299 = math.rsqrt %298 : vector<6x1xf32>
    %300 = vector.broadcast %299 : vector<6x1xf32> to vector<6x32xf32>
    %301 = arith.mulf %296, %300 : vector<6x32xf32>
    %302 = vector.broadcast %282 : vector<1x32xf32> to vector<6x32xf32>
    %303 = arith.mulf %301, %302 : vector<6x32xf32>
    %304 = vector.broadcast %283 : vector<1x32xf32> to vector<6x32xf32>
    %305 = arith.addf %303, %304 : vector<6x32xf32>
    %c0_125 = arith.constant 0 : index
    %c0_126 = arith.constant 0 : index
    %306 = vector.load %arg4[%c0_125, %c0_126] : memref<32x32xf32, #tpu.memory_space<vmem>>, vector<32x32xf32>
    %cst_127 = arith.constant dense<0.000000e+00> : vector<6x32xf32>
    %307 = tpu.matmul %305, %306, %cst_127 {dimension_numbers = #tpu.dot_dimension_numbers<[1], [0], [0], [1], [0, 0, 1, 1], [], []>} : vector<6x32xf32>, vector<32x32xf32>, vector<6x32xf32> -> vector<6x32xf32>
    %c5_128 = arith.constant 5 : index
    %c0_129 = arith.constant 0 : index
    %308 = vector.load %arg9[%c5_128, %c0_129] : memref<12x128xf32, #tpu.memory_space<vmem>>, vector<1x32xf32>
    %309 = vector.broadcast %308 : vector<1x32xf32> to vector<6x32xf32>
    %310 = arith.addf %307, %309 : vector<6x32xf32>
    %cst_130 = arith.constant 0.176776692 : f32
    %311 = vector.broadcast %cst_130 : f32 to vector<6x32xf32>
    %312 = arith.mulf %310, %311 : vector<6x32xf32>
    %cst_131 = arith.constant dense<0.000000e+00> : vector<6x16xf32>
    %313 = tpu.matmul %312, %30, %cst_131 {dimension_numbers = #tpu.dot_dimension_numbers<[1], [1], [0], [0], [0, 0, 1, 0], [], []>} : vector<6x32xf32>, vector<16x32xf32>, vector<6x16xf32> -> vector<6x16xf32>
    %cst_132 = arith.constant dense<0xFF800000> : vector<16xf32>
    %314 = vector.multi_reduction <maximumf>, %313, %cst_132 [0] : vector<6x16xf32> to vector<16xf32>
    %315 = vector.shape_cast %314 : vector<16xf32> to vector<1x16xf32>
    %316 = vector.broadcast %315 : vector<1x16xf32> to vector<6x16xf32>
    %317 = arith.subf %313, %316 : vector<6x16xf32>
    %318 = math.exp %317 : vector<6x16xf32>
    %cst_133 = arith.constant dense<0.000000e+00> : vector<16xf32>
    %319 = vector.multi_reduction <add>, %318, %cst_133 [0] : vector<6x16xf32> to vector<16xf32>
    %320 = vector.shape_cast %319 : vector<16xf32> to vector<1x16xf32>
    %321 = tpu.reciprocal %320 {approx = true} : vector<1x16xf32> -> vector<1x16xf32>
    %322 = vector.broadcast %321 : vector<1x16xf32> to vector<6x16xf32>
    %323 = arith.mulf %318, %322 : vector<6x16xf32>
    %cst_134 = arith.constant 9.99999993E-9 : f32
    %324 = vector.broadcast %cst_134 : f32 to vector<6x16xf32>
    %325 = arith.addf %323, %324 : vector<6x16xf32>
    %cst_135 = arith.constant dense<0.000000e+00> : vector<6xf32>
    %326 = vector.multi_reduction <add>, %325, %cst_135 [1] : vector<6x16xf32> to vector<6xf32>
    %327 = vector.shape_cast %326 : vector<6xf32> to vector<6x1xf32>
    %cst_136 = arith.constant 1.000000e+00 : f32
    %328 = vector.broadcast %cst_136 : f32 to vector<6x1xf32>
    %329 = arith.divf %328, %327 : vector<6x1xf32>
    %330 = vector.broadcast %329 : vector<6x1xf32> to vector<6x16xf32>
    %331 = arith.mulf %325, %330 : vector<6x16xf32>
    %cst_137 = arith.constant dense<0.000000e+00> : vector<6x32xf32>
    %332 = tpu.matmul %331, %31, %cst_137 {dimension_numbers = #tpu.dot_dimension_numbers<[1], [0], [0], [1], [0, 0, 1, 1], [], []>} : vector<6x16xf32>, vector<16x32xf32>, vector<6x32xf32> -> vector<6x32xf32>
    %c0_138 = arith.constant 0 : index
    %c0_139 = arith.constant 0 : index
    %333 = vector.load %arg5[%c0_138, %c0_139] : memref<32x96xf32, #tpu.memory_space<vmem>>, vector<32x96xf32>
    %cst_140 = arith.constant dense<0.000000e+00> : vector<6x96xf32>
    %334 = tpu.matmul %332, %333, %cst_140 {dimension_numbers = #tpu.dot_dimension_numbers<[1], [0], [0], [1], [0, 0, 1, 1], [], []>} : vector<6x32xf32>, vector<32x96xf32>, vector<6x96xf32> -> vector<6x96xf32>
    %c6_141 = arith.constant 6 : index
    %c0_142 = arith.constant 0 : index
    %335 = vector.load %arg9[%c6_141, %c0_142] : memref<12x128xf32, #tpu.memory_space<vmem>>, vector<1x96xf32>
    %336 = vector.broadcast %335 : vector<1x96xf32> to vector<6x96xf32>
    %337 = arith.addf %334, %336 : vector<6x96xf32>
    %c0_143 = arith.constant 0 : index
    %c0_144 = arith.constant 0 : index
    %338 = vector.load %arg6[%c0_143, %c0_144] : memref<32x96xf32, #tpu.memory_space<vmem>>, vector<32x96xf32>
    %cst_145 = arith.constant dense<0.000000e+00> : vector<6x96xf32>
    %339 = tpu.matmul %281, %338, %cst_145 {dimension_numbers = #tpu.dot_dimension_numbers<[1], [0], [0], [1], [0, 0, 1, 1], [], []>} : vector<6x32xf32>, vector<32x96xf32>, vector<6x96xf32> -> vector<6x96xf32>
    %c7_146 = arith.constant 7 : index
    %c0_147 = arith.constant 0 : index
    %340 = vector.load %arg9[%c7_146, %c0_147] : memref<12x128xf32, #tpu.memory_space<vmem>>, vector<1x96xf32>
    %341 = vector.broadcast %340 : vector<1x96xf32> to vector<6x96xf32>
    %342 = arith.addf %339, %341 : vector<6x96xf32>
    %343 = vector.extract_strided_slice %337 {offsets = [0, 0], sizes = [6, 32], strides = [1, 1]} : vector<6x96xf32> to vector<6x32xf32>
    %344 = vector.extract_strided_slice %342 {offsets = [0, 0], sizes = [6, 32], strides = [1, 1]} : vector<6x96xf32> to vector<6x32xf32>
    %345 = arith.addf %343, %344 : vector<6x32xf32>
    %346 = arith.negf %345 : vector<6x32xf32>
    %347 = math.exp %346 : vector<6x32xf32>
    %cst_148 = arith.constant 1.000000e+00 : f32
    %348 = vector.broadcast %cst_148 : f32 to vector<6x32xf32>
    %349 = arith.addf %348, %347 : vector<6x32xf32>
    %350 = arith.divf %348, %349 : vector<6x32xf32>
    %351 = vector.extract_strided_slice %337 {offsets = [0, 32], sizes = [6, 32], strides = [1, 1]} : vector<6x96xf32> to vector<6x32xf32>
    %352 = vector.extract_strided_slice %342 {offsets = [0, 32], sizes = [6, 32], strides = [1, 1]} : vector<6x96xf32> to vector<6x32xf32>
    %353 = arith.addf %351, %352 : vector<6x32xf32>
    %354 = arith.negf %353 : vector<6x32xf32>
    %355 = math.exp %354 : vector<6x32xf32>
    %cst_149 = arith.constant 1.000000e+00 : f32
    %356 = vector.broadcast %cst_149 : f32 to vector<6x32xf32>
    %357 = arith.addf %356, %355 : vector<6x32xf32>
    %358 = arith.divf %356, %357 : vector<6x32xf32>
    %359 = vector.extract_strided_slice %337 {offsets = [0, 64], sizes = [6, 32], strides = [1, 1]} : vector<6x96xf32> to vector<6x32xf32>
    %360 = vector.extract_strided_slice %342 {offsets = [0, 64], sizes = [6, 32], strides = [1, 1]} : vector<6x96xf32> to vector<6x32xf32>
    %361 = arith.mulf %350, %360 : vector<6x32xf32>
    %362 = arith.addf %359, %361 : vector<6x32xf32>
    %363 = math.tanh %362 : vector<6x32xf32>
    %cst_150 = arith.constant 1.000000e+00 : f32
    %364 = vector.broadcast %cst_150 : f32 to vector<6x32xf32>
    %365 = arith.subf %364, %358 : vector<6x32xf32>
    %366 = arith.mulf %365, %363 : vector<6x32xf32>
    %367 = arith.mulf %358, %281 : vector<6x32xf32>
    %368 = arith.addf %366, %367 : vector<6x32xf32>
    %c8_151 = arith.constant 8 : index
    %c0_152 = arith.constant 0 : index
    %369 = vector.load %arg9[%c8_151, %c0_152] : memref<12x128xf32, #tpu.memory_space<vmem>>, vector<1x32xf32>
    %c9_153 = arith.constant 9 : index
    %c0_154 = arith.constant 0 : index
    %370 = vector.load %arg9[%c9_153, %c0_154] : memref<12x128xf32, #tpu.memory_space<vmem>>, vector<1x32xf32>
    %cst_155 = arith.constant dense<0.000000e+00> : vector<6xf32>
    %371 = vector.multi_reduction <add>, %368, %cst_155 [1] : vector<6x32xf32> to vector<6xf32>
    %372 = vector.shape_cast %371 : vector<6xf32> to vector<6x1xf32>
    %cst_156 = arith.constant 3.200000e+01 : f32
    %373 = vector.broadcast %cst_156 : f32 to vector<6x1xf32>
    %374 = arith.divf %372, %373 : vector<6x1xf32>
    %375 = vector.broadcast %374 : vector<6x1xf32> to vector<6x32xf32>
    %376 = arith.subf %368, %375 : vector<6x32xf32>
    %377 = arith.mulf %376, %376 : vector<6x32xf32>
    %cst_157 = arith.constant dense<0.000000e+00> : vector<6xf32>
    %378 = vector.multi_reduction <add>, %377, %cst_157 [1] : vector<6x32xf32> to vector<6xf32>
    %379 = vector.shape_cast %378 : vector<6xf32> to vector<6x1xf32>
    %cst_158 = arith.constant 3.200000e+01 : f32
    %380 = vector.broadcast %cst_158 : f32 to vector<6x1xf32>
    %381 = arith.divf %379, %380 : vector<6x1xf32>
    %382 = vector.broadcast %374 : vector<6x1xf32> to vector<6x32xf32>
    %383 = arith.subf %368, %382 : vector<6x32xf32>
    %cst_159 = arith.constant 9.99999974E-6 : f32
    %384 = vector.broadcast %cst_159 : f32 to vector<6x1xf32>
    %385 = arith.addf %381, %384 : vector<6x1xf32>
    %386 = math.rsqrt %385 : vector<6x1xf32>
    %387 = vector.broadcast %386 : vector<6x1xf32> to vector<6x32xf32>
    %388 = arith.mulf %383, %387 : vector<6x32xf32>
    %389 = vector.broadcast %369 : vector<1x32xf32> to vector<6x32xf32>
    %390 = arith.mulf %388, %389 : vector<6x32xf32>
    %391 = vector.broadcast %370 : vector<1x32xf32> to vector<6x32xf32>
    %392 = arith.addf %390, %391 : vector<6x32xf32>
    %c0_160 = arith.constant 0 : index
    %c0_161 = arith.constant 0 : index
    %393 = vector.load %arg7[%c0_160, %c0_161] : memref<32x128xf32, #tpu.memory_space<vmem>>, vector<32x128xf32>
    %cst_162 = arith.constant dense<0.000000e+00> : vector<6x128xf32>
    %394 = tpu.matmul %392, %393, %cst_162 {dimension_numbers = #tpu.dot_dimension_numbers<[1], [0], [0], [1], [0, 0, 1, 1], [], []>} : vector<6x32xf32>, vector<32x128xf32>, vector<6x128xf32> -> vector<6x128xf32>
    %c10_163 = arith.constant 10 : index
    %c0_164 = arith.constant 0 : index
    %395 = vector.load %arg9[%c10_163, %c0_164] : memref<12x128xf32, #tpu.memory_space<vmem>>, vector<1x128xf32>
    %396 = vector.broadcast %395 : vector<1x128xf32> to vector<6x128xf32>
    %397 = arith.addf %394, %396 : vector<6x128xf32>
    %cst_165 = arith.constant 0.000000e+00 : f32
    %398 = vector.broadcast %cst_165 : f32 to vector<6x128xf32>
    %399 = arith.maximumf %397, %398 : vector<6x128xf32>
    %c0_166 = arith.constant 0 : index
    %c0_167 = arith.constant 0 : index
    %400 = vector.load %arg8[%c0_166, %c0_167] : memref<32x128xf32, #tpu.memory_space<vmem>>, vector<32x128xf32>
    %cst_168 = arith.constant dense<0.000000e+00> : vector<6x32xf32>
    %401 = tpu.matmul %399, %400, %cst_168 {dimension_numbers = #tpu.dot_dimension_numbers<[1], [1], [0], [0], [0, 0, 1, 0], [], []>} : vector<6x128xf32>, vector<32x128xf32>, vector<6x32xf32> -> vector<6x32xf32>
    %402 = arith.addf %368, %401 : vector<6x32xf32>
    %c11_169 = arith.constant 11 : index
    %c0_170 = arith.constant 0 : index
    %403 = vector.load %arg9[%c11_169, %c0_170] : memref<12x128xf32, #tpu.memory_space<vmem>>, vector<1x32xf32>
    %404 = vector.broadcast %403 : vector<1x32xf32> to vector<6x32xf32>
    %405 = arith.addf %402, %404 : vector<6x32xf32>
    %c0_171 = arith.constant 0 : index
    %c0_172 = arith.constant 0 : index
    %c0_173 = arith.constant 0 : index
    %406 = vector.load %arg10[%c0_171, %c0_172, %c0_173] : memref<1x6x32xf32, #tpu.memory_space<vmem>>, vector<1x6x32xf32>
    %407 = vector.shape_cast %406 : vector<1x6x32xf32> to vector<6x32xf32>
    %408 = vector.shape_cast %405 : vector<6x32xf32> to vector<1x6x32xf32>
    tpu.vector_store %arg10[%c0_171, %c0_172, %c0_173], %408 {strides = array<i32>} : memref<1x6x32xf32, #tpu.memory_space<vmem>>, vector<1x6x32xf32>,
    return
  }
  func.func @transform_0(%arg0: i32) -> (i32, i32) {
    %c0_i32 = arith.constant 0 : i32
    %c0_i32_0 = arith.constant 0 : i32
    return %arg0, %c0_i32 : i32, i32
  }
  func.func @transform_1(%arg0: i32) -> (i32, i32, i32) {
    %c0_i32 = arith.constant 0 : i32
    %c0_i32_0 = arith.constant 0 : i32
    %c0_i32_1 = arith.constant 0 : i32
    return %arg0, %c0_i32, %c0_i32_0 : i32, i32, i32
  }
  func.func @transform_2(%arg0: i32) -> (i32, i32) {
    %c0_i32 = arith.constant 0 : i32
    %c0_i32_0 = arith.constant 0 : i32
    %c0_i32_1 = arith.constant 0 : i32
    return %c0_i32, %c0_i32_0 : i32, i32
  }
  func.func @transform_3(%arg0: i32) -> (i32, i32) {
    %c0_i32 = arith.constant 0 : i32
    %c0_i32_0 = arith.constant 0 : i32
    %c0_i32_1 = arith.constant 0 : i32
    return %c0_i32, %c0_i32_0 : i32, i32
  }
  func.func @transform_4(%arg0: i32) -> (i32, i32) {
    %c0_i32 = arith.constant 0 : i32
    %c0_i32_0 = arith.constant 0 : i32
    %c0_i32_1 = arith.constant 0 : i32
    return %c0_i32, %c0_i32_0 : i32, i32
  }
  func.func @transform_5(%arg0: i32) -> (i32, i32) {
    %c0_i32 = arith.constant 0 : i32
    %c0_i32_0 = arith.constant 0 : i32
    %c0_i32_1 = arith.constant 0 : i32
    return %c0_i32, %c0_i32_0 : i32, i32
  }
  func.func @transform_6(%arg0: i32) -> (i32, i32) {
    %c0_i32 = arith.constant 0 : i32
    %c0_i32_0 = arith.constant 0 : i32
    %c0_i32_1 = arith.constant 0 : i32
    return %c0_i32, %c0_i32_0 : i32, i32
  }
  func.func @transform_7(%arg0: i32) -> (i32, i32) {
    %c0_i32 = arith.constant 0 : i32
    %c0_i32_0 = arith.constant 0 : i32
    %c0_i32_1 = arith.constant 0 : i32
    return %c0_i32, %c0_i32_0 : i32, i32
  }
  func.func @transform_8(%arg0: i32) -> (i32, i32) {
    %c0_i32 = arith.constant 0 : i32
    %c0_i32_0 = arith.constant 0 : i32
    %c0_i32_1 = arith.constant 0 : i32
    return %c0_i32, %c0_i32_0 : i32, i32
  }
  func.func @transform_9(%arg0: i32) -> (i32, i32, i32) {
    %c0_i32 = arith.constant 0 : i32
    %c0_i32_0 = arith.constant 0 : i32
    %c0_i32_1 = arith.constant 0 : i32
    return %arg0, %c0_i32, %c0_i32_0 : i32, i32, i32
  }
}

</mosaic_0001>

<bundles_post_ra>
// kernel: tpu_custom_call.1
= control target key start
LH: loop header
LB: loop body
LE: loop exit
PB: predicated region body
PF: predicated region fallthrough
CT: control target
= control target key end

     0   :  { %14 = vsyncpa [#allocation3], 0  ;;  %s2752_s0 = inlined_call_operand.hbm [shape: f32[32,64], index: 0, kind: input, shape index: {}]   ;;  %s2753_s1 = inlined_call_operand.vmem [shape: f32[2,6,32], index: 1, kind: input, shape index: {}]   ;;  %s2754_s2 = inlined_call_operand.hbm [shape: f32[64,64], index: 2, kind: input, shape index: {}]   ;;  %s2755_s3 = inlined_call_operand.hbm [shape: f32[32,32], index: 3, kind: input, shape index: {}]   ;;  %s2756_s4 = inlined_call_operand.hbm [shape: f32[32,96], index: 4, kind: input, shape index: {}]   ;;  %s2757_s5 = inlined_call_operand.vmem [shape: f32[32,96], index: 5, kind: input, shape index: {}]   ;;  %s2758_s6 = inlined_call_operand.hbm [shape: f32[32,128], index: 6, kind: input, shape index: {}]   ;;  %s2759_s7 = inlined_call_operand.hbm [shape: f32[32,128], index: 7, kind: input, shape index: {}]   ;;  %s2760_s8 = inlined_call_operand.hbm [shape: f32[12,128], index: 8, kind: input, shape index: {}]   ;;  %s2761_s9 = inlined_call_operand.vmem [shape: f32[2,6,32], index: 9, kind: output, shape index: {}]  }
   0x1   :  { %16 = vsyncpa [#allocation3 + $0x1], 0 }
   0x2   :  { %17 = vsyncpa [#allocation5], 0 }
   0x3   :  { %18 = vsyncpa [#allocation8], 0 }
   0x4   :  { %19 = vsyncpa [#allocation11], 0  ;;  %s2274_s30 = smov 0   ;;  %s2276_s10 = smov 0  }
   0x5   :  { %s2278_s11 = smov 0   ;;  %s2280_s12 = smov 0  }
   0x6 LB: > { %s266_s15 = sshll.u32 %s2754_s2, 4  ;;  %s2298_s16 = sadd.s32 4294967295, %s2209_s12   ;;  %s2209_s12 = sphi %s2280_s12, %s2771_s12   ;;  %s2205_s11 = sphi %s2278_s11, %s2770_s11   ;;  %s2201_s10 = sphi %s2276_s10, %s2769_s10   ;;  %s2197_s30 = sphi %s2274_s30, %s2768_s30   ;;  %s267_s15 = int_to_ptr.hbm [resolvable:$true] %s266_s15 }
   0x7   : > { %p1720_p0 = scmp.ge.s32.totalorder %s2209_s12, 1  ;;  %p46_p1 = scmp.eq.s32.totalorder %s2298_s16, 0 }
   0x8   : > { %p255_p2 = scmp.lt.s32.totalorder %s2209_s12, 3  ;;  %s2211_s18 = smov [#allocation4]  }
   0x9   : > { %s268_s19 = sshll.u32 %s2211_s18, 4  ;;  %s294_s22 = sshll.u32 %s2756_s4, 4  ;;  %s269_s19 = int_to_ptr.vmem [resolvable:$true] %s268_s19  ;;  %s295_s22 = int_to_ptr.hbm [resolvable:$true] %s294_s22 }
   0xa   : > { %p2303_p3 = pnand %p1720_p0, %p255_p2  ;;  %s325_s26 = sshll.u32 %s2759_s7, 4  ;;  %s326_s26 = int_to_ptr.hbm [resolvable:$true] %s325_s26 }
   0xb   : > { %s2212_s27 = smov [#allocation7]   ;;  %s2762_s29 = smov 128  }
   0xc   : > { %p1799_p4 = pneg %p2303_p3  ;;  %s296_s28 = sshll.u32 %s2212_s27, 4  ;;  %s297_s28 = int_to_ptr.vmem [resolvable:$true] %s296_s28 }
   0xd   : > { %s2214_s13 = smov 8   ;;  %s280_s20 = sshll.u32 %s2755_s3, 4  ;;  %s281_s20 = int_to_ptr.hbm [resolvable:$true] %s280_s20 }
   0xe   : > { %p2314_p5 = pnand %p1799_p4, %p46_p1  ;;  %s2215_s21 = smov [#allocation10]  }
   0xf   : > { %s327_s24 = sshll.u32 %s2215_s21, 4  ;;  %s311_s27 = sshll.u32 %s2758_s6, 4  ;;  %s328_s24 = int_to_ptr.vmem [resolvable:$true] %s327_s24  ;;  %s312_s27 = int_to_ptr.hbm [resolvable:$true] %s311_s27 }
  0x10   : > { %1802 = dma.hbm_to_vmem [thread:$0]  (!%p2314_p5), %s267_s15, 1024, %s269_s19, [#allocation5], %s2762_s29, %s2762_s29, %s2214_s13  }
  0x11   : > { %1808 = dma.hbm_to_vmem [thread:$0]  (!%p2314_p5), %s295_s22, 512, %s297_s28, [#allocation8], %s2762_s29, %s2762_s29, %s2214_s13  }
  0x12   : > { %1814 = dma.hbm_to_vmem [thread:$0]  (!%p2314_p5), %s326_s26, 512, %s328_s24, [#allocation11], %s2762_s29, %s2762_s29, %s2214_s13  }
  0x13   : > { %s2216_s15 = smov [#allocation6]   ;;  %s339_s14 = sshll.u32 %s2760_s8, 4  ;;  %s340_s14 = int_to_ptr.hbm [resolvable:$true] %s339_s14 }
  0x14   : > { %s282_s19 = sshll.u32 %s2216_s15, 4  ;;  %s2217_s18 = smov [#allocation9]   ;;  %s283_s19 = int_to_ptr.vmem [resolvable:$true] %s282_s19 }
  0x15   : > { %1805 = dma.hbm_to_vmem [thread:$0]  (!%p2314_p5), %s281_s20, 512, %s283_s19, [#allocation5], %s2762_s29, %s2762_s29, %s2214_s13  }
  0x16   : > { %s313_s21 = sshll.u32 %s2217_s18, 4  ;;  %s2218_s20 = smov [#allocation12]   ;;  %s314_s21 = int_to_ptr.vmem [resolvable:$true] %s313_s21 }
  0x17   : > { %1811 = dma.hbm_to_vmem [thread:$0]  (!%p2314_p5), %s312_s27, 512, %s314_s21, [#allocation8], %s2762_s29, %s2762_s29, %s2214_s13  }
  0x18   : > { %s341_s24 = sshll.u32 %s2218_s20, 4  ;;  %s2361_s15 = sadd.s32 1, %s2209_s12   ;;  %s342_s24 = int_to_ptr.vmem [resolvable:$true] %s341_s24 }
  0x19   : > { %1817 = dma.hbm_to_vmem [thread:$0]  (!%p2314_p5), %s340_s14, 256, %s342_s24, [#allocation11], %s2762_s29, %s2762_s29, %s2214_s13  }
  0x1a   : > { %s29_s19 = ssub.s32 %s2209_s12, %s2361_s15  ;;  %s32_s25 = sadd.s32 1, %s2205_s11 }
  0x1b   : > { %p30_p6 = scmp.eq.s32.totalorder %s29_s19, 0  ;;  %p39_p7 = scmp.ne.s32.totalorder %s2205_s11, %s2201_s10 }
  0x1c   : > { %p40_p8 = scmp.eq.s32.totalorder %s2209_s12, 0  ;;  %p45_p9 = scmp.ne.s32.totalorder %s2201_s10, %s2197_s30 }
  0x1d   : > { %s2372_s22 = scalar_select %p30_p6, %s2205_s11, %s32_s25  }
  0x1e   : > { %p2376_p10 = por %p46_p1, %p45_p9  ;;  %p1828_p11 = scmp.lt.s32.totalorder %s2209_s12, 2 }
  0x1f   : > { %s355_s23 = sand.u32 1, %s2205_s11   ;;  %s1772_s26 = sshll.u32 %s2209_s12, 4 }
  0x20   : > { %p41_p12 = por %p40_p8, %p39_p7  ;;  %s1728_s28 = sshll.u32 %s355_s23, 4 }
  0x21   : > { %s364_s21 = scalar_lea.hbm %s2752_s0, %s1772_s26  ;;  %s359_s24 = scalar_lea.vmem [#allocation2], %s1728_s28 }
  0x22   : > { %s365_s20 = sshll.u32 %s364_s21, 4  ;;  %s367_s19 = sshll.u32 %s359_s24, 4  ;;  %s366_s20 = int_to_ptr.hbm [resolvable:$true] %s365_s20  ;;  %s368_s19 = int_to_ptr.vmem [resolvable:$true] %s367_s19 }
  0x23   : > { %p2386_p13 = pnand %p1828_p11, %p41_p12  ;;  %s356_s25 = scalar_lea.sflag [#allocation3], %s355_s23 }
  0x24   : > { %s2133_s29 = sshra.s32 %s366_s20, 4  ;;  %s2140_s28 = scalar_lea.hbm %s2752_s0, 32  ;;  %s2134_s29 = int_to_ptr.hbm [resolvable:$true] %s2133_s29 }
  0x25   : > { %s2135_s12 = scalar_lea.hbm %s2134_s29, 16  ;;  %p2137_p2 = pneg %p2386_p13 }
  0x26   : > { %p2136_p0 = scmp.ne.s32.totalorder %s2134_s29, %s2135_s12  ;;  %p2141_p6 = scmp.lt.s32.totalorder %s2134_s29, %s2752_s0 }
  0x27   : > { %p2142_p7 = scmp.lt.s32.totalorder %s2140_s28, %s2135_s12 }
  0x28   : > { %p2138_p4 = pnand %p2137_p2, %p2136_p0 }
  0x29   : > { %p2143_p8 = por %p2142_p7, %p2141_p6 }
  0x2a   : > { %p2139_p5 = pneg %p2138_p4 }
  0x2c   : > { %p2144_p9 = pnand %p2143_p8, %p2139_p5 }
  0x2e   : > { %2147 = shalt.err (!%p2144_p9)
}
  0x2f   : > { %s2767_s23 = smov 128   ;;  %386 = sbr.rel (%p2303_p3) target bundleno = 7408 (0x1cf0), region = 56 }
  0x30   : > { %1821 = dma.hbm_to_vmem [thread:$0]  (!%p2386_p13), %s366_s20, 256, %s368_s19, %s356_s25, %s2767_s23, %s2767_s23, %s2214_s13  }
  0x31   : > { %s388_s24 = sand.u32 (!%p2303_p3), 1, %s2201_s10  }
  0x32   : > { %s1732_s26 = sshll.u32 (!%p2303_p3), %s388_s24, 4  ;;  %s389_s14 = scalar_lea.sflag (!%p2303_p3), [#allocation3], %s388_s24 }
  0x33   : > { %s392_s18 = scalar_lea.vmem (!%p2303_p3), [#allocation2], %s1732_s26 }
  0x34   : > { %2180 = dma.done.wait (%p2376_p10), %s389_s14, 256  }
  0x35   : > { %2182 = vsyncadd (%p2376_p10), %s389_s14, 4294967040 }
  0x36   : > { %2184 = dma.done.wait (%p46_p1), [#allocation5], 1536  }
  0x37   : > { %2186 = vsyncadd (%p46_p1), [#allocation5], 4294965760 }
  0x38   : > { %2188 = dma.done.wait (%p46_p1), [#allocation8], 1024  }
  0x39   : > { %2190 = vsyncadd (%p46_p1), [#allocation8], 4294966272 }
  0x3a   : > { %2192 = dma.done.wait (%p46_p1), [#allocation11], 768  }
  0x3b   : > { %2194 = vsyncadd (%p46_p1), [#allocation11], 4294966528  ;;  %p462_p3 = scmp.lt.s32.totalorder %s2298_s16, 1  ;;  %vm474_vm0 = vcmask 523264   ;;  %vm574_vm1 = vcmask 259072   ;;  %v470_v0 = vld [vmem:[%s392_s18] sm:$0xff] }
  0x3c   : > { %v475_v2 = vsel %vm474_vm0, %v470_v0, 0.0  ;;  %v471_v4 = vld [vmem:[%s392_s18 + $0x8] sm:$0xff]  ;;  %v2219_v6 = vmov 64.0   ;;  %v2220_v8 = vmov 32.0   ;;  %v538_v36 = vld [vmem:[#allocation4 + $0x30] sm:$0xff]  ;;  %v536_v38 = vld [vmem:[#allocation4 + $0x20] sm:$0xff] }
  0x3d   : > { %s2773_s16 = smov (!%p462_p3, %s2298_s16), 1  ;;  %476 = vadd.xlane.f32.xlu0 %v475_v2  ;;  %v478_v5 = vsel %vm474_vm0, %v471_v4, 0.0  ;;  %1897 = vrcp.f32 %v2219_v6  ;;  %v539_v35 = vld [vmem:[#allocation4 + $0x38] sm:$0xff]  ;;  %v537_v37 = vld [vmem:[#allocation4 + $0x28] sm:$0xff]  ;;  %v534_v40 = vld [vmem:[#allocation4 + $0x10] sm:$0xff]  ;;  %vm614_vm13 = vcmask 261120  }
  0x3e   : > { %s1739_s17 = sshll.u32 %s2773_s16, 3  ;;  %1899 = vrcp.f32 %v2220_v8  ;;  %556 = vmatpush.msra.mxu0 %v539_v35  ;;  %v535_v39 = vld [vmem:[#allocation4 + $0x18] sm:$0xff]  ;;  %v533_v41 = vld [vmem:[#allocation4 + $0x8] sm:$0xff]  ;;  %v532_v42 = vld [vmem:[#allocation4] sm:$0xff]  ;;  %s2221_s24 = smov 96   ;;  %vm668_vm14 = vcmask 128000  }
  0x3f   : > { %s465_s27 = scalar_lea.vmem %s2753_s1, %s1739_s17  ;;  %v2457_v46 = vld [vmem:[#allocation6 + $0x18] sm:$0xff]  ;;  %v2460_v47 = vld [vmem:[#allocation6 + $0x10] sm:$0xff]  ;;  %v2462_v48 = vld [vmem:[#allocation6 + $0x8] sm:$0xff]  ;;  %s2222_s26 = smov 32  }
  0x40   : > { %v2432_v1 = vld [vmem:[%s465_s27] sm:$0x3f]  ;;  %557 = vmatpush.msra.mxu0 %v538_v36  ;;  %630 = vmatpush.msra.mxu1 %v2457_v46  ;;  %s2223_s14 = smov 64   ;;  %s469_s13 = scalar_lea.vmem %s2761_s9, %s1739_s17 }
  0x41   : > { %v575_v3 = vsel %vm574_vm1, %v2432_v1, 0.0  ;;  %v2465_v51 = vld [vmem:[#allocation6] sm:$0xff] }
  0x42   : > { %576 = vadd.xlane.f32.xlu1 %v575_v3  ;;  %558 = vmatpush.msra.mxu0 %v537_v37 }
  0x43   : > { %v1898_v7 = vpop.eup %1897  ;;  %631 = vmatpush.msra.mxu1 %v2460_v47 }
  0x44   : > { %v482_v9 = vmul.f32 64.0, %v1898_v7  ;;  %v1900_v11 = vpop.eup %1899  ;;  %vm486_vm2 = vweird.f32 %v1898_v7  ;;  %559 = vmatpush.msra.mxu0 %v536_v38  ;;  %v2521_v38 = vld [vmem:[#allocation12 + $0x5] ss:$0 sm:$0xff] }
  0x45   : > { %479 = vadd.xlane.f32.xlu0 %v478_v5  ;;  %v579_v13 = vmul.f32 32.0, %v1900_v11  ;;  %vm583_vm3 = vweird.f32 %v1900_v11  ;;  %632 = vmatpush.msra.mxu1 %v2462_v48  ;;  %v1886_v5 = vld [vmem:[#allocation12 + $0x1] ss:$0 sm:$0xff] }
  0x46   : > { %v483_v10 = vsub.f32 1.0, %v482_v9  ;;  %560 = vmatpush.msra.mxu0 %v535_v39  ;;  %v2523_v39 = vld [vmem:[#allocation9 + $0x18] sm:$0xff] }
  0x47   : > { %v580_v15 = vsub.f32 1.0, %v579_v13  ;;  %633 = vmatpush.msra.mxu1 %v2465_v51 }
  0x48   : > { %v484_v12 = vmul.f32 %v1898_v7, %v483_v10  ;;  %561 = vmatpush.msra.mxu0 %v534_v40  ;;  %v2527_v40 = vld [vmem:[#allocation9 + $0x10] sm:$0xff] }
  0x49   : > { %v581_v17 = vmul.f32 %v1900_v11, %v580_v15 }
  0x4a   : > { %v485_v14 = vadd.f32 %v1898_v7, %v484_v12  ;;  %562 = vmatpush.msra.mxu0 %v533_v41 }
  0x4b   : > { %v582_v20 = vadd.f32 %v1900_v11, %v581_v17 }
  0x4c   : > { %v487_v16 = vsel %vm486_vm2, %v1898_v7, %v485_v14  ;;  %563 = vmatpush.msra.mxu0 %v532_v42 }
  0x4d   : > { %v2442_v23 = vsel %vm583_vm3, %v1900_v11, %v582_v20 }
  0xb0   : > { %v477_v18 = vpop.xlane.xlu0 %476 }
  0xb1   : > { %v488_v19 = vmul.f32 %v487_v16, %v477_v18 }
  0xb3   : > { %v2438_v21 = vsub.f32 %v470_v0, %v488_v19  ;;  %v1885_v0 = vld [vmem:[#allocation12] ss:$0 sm:$0xff] }
  0xb5   : > { %v492_v22 = vmul.f32 %v2438_v21, %v2438_v21  ;;  %v577_v24 = vpop.xlane.xlu1 %576 }
  0xb6   : > { %v585_v28 = vmul.f32 %v2442_v23, %v577_v24 }
  0xb7   : > { %v494_v25 = vsel %vm474_vm0, %v492_v22, 0.0 }
  0xb8   : > { %495 = vadd.xlane.f32.xlu1 %v494_v25  ;;  %v480_v26 = vpop.xlane.xlu0 %479  ;;  %v2449_v30 = vsub.f32 %v2432_v1, %v585_v28  ;;  %v2477_v25 = vld [vmem:[#allocation12 + $0x4] ss:$0 sm:$0xff]  ;;  %v2485_v28 = vld [vmem:[%s2757_s5 + $0x18] sm:$0xff] }
  0xb9   : > { %v489_v27 = vmul.f32 %v487_v16, %v480_v26  ;;  %788 = vmatpush.msrb.mxu1 %v2485_v28 }
  0xba   : > { %v587_v33 = vmul.f32 %v2449_v30, %v2449_v30 }
  0xbb   : > { %v2446_v29 = vsub.f32 %v471_v4, %v489_v27 }
  0xbc   : > { %v588_v34 = vsel %vm574_vm1, %v587_v33, 0.0  ;;  %v1889_v33 = vld [vmem:[#allocation12 + $0x2] ss:$0 sm:$0xff] }
  0xbd   : > { %v493_v31 = vmul.f32 %v2446_v29, %v2446_v29 }
  0xbf   : > { %v497_v32 = vsel %vm474_vm0, %v493_v31, 0.0  ;;  %v2502_v31 = vld [vmem:[%s2757_s5] sm:$0xff] }
  0xc0   : > { %498 = vadd.xlane.f32.xlu2 %v497_v32 }
  0xc8   : > { %589 = vadd.xlane.f32.xlu2 %v588_v34 }
 0x12b   : > { %v496_v43 = vpop.xlane.xlu1 %495 }
 0x12c   : > { %v500_v44 = vmul.f32 %v496_v43, %v487_v16  ;;  %v2531_v43 = vld [vmem:[#allocation9 + $0x8] sm:$0xff] }
 0x12e   : > { %v502_v45 = vadd.f32 1e-05, %v500_v44 }
 0x130   : > { %1901 = vrsqrt.f32 %v502_v45  ;;  %vm510_vm5 = vweird.f32 %v502_v45 }
 0x133   : > { %v499_v49 = vpop.xlane.xlu2 %498 }
 0x134   : > { %v501_v50 = vmul.f32 %v499_v49, %v487_v16 }
 0x136   : > { %v1902_v52 = vpop.eup %1901  ;;  %v503_v53 = vadd.f32 1e-05, %v501_v50 }
 0x137   : > { %v505_v54 = vmul.f32 %v1902_v52, %v502_v45  ;;  %vm511_vm4 = vweird.f32 %v1902_v52  ;;  %v2534_v45 = vld [vmem:[#allocation9] sm:$0xff] }
 0x138   : > { %1903 = vrsqrt.f32 %v503_v53  ;;  %vm512_vm6 = vmor %vm510_vm5, %vm511_vm4  ;;  %vm520_vm8 = vweird.f32 %v503_v53  ;;  %vm714_vm4 = vcmask 130048  }
 0x139   : > { %v506_v55 = vmul.f32 %v1902_v52, %v505_v54 }
 0x13b   : > { %v507_v56 = vmul.f32 0.5, %v506_v55  ;;  %v590_v57 = vpop.xlane.xlu2 %589 }
 0x13c   : > { %v591_v58 = vmul.f32 %v590_v57, %v2442_v23 }
 0x13d   : > { %v508_v59 = vsub.f32 1.5, %v507_v56 }
 0x13e   : > { %v1904_v60 = vpop.eup %1903  ;;  %v592_v61 = vadd.f32 1e-05, %v591_v58 }
 0x13f   : > { %v509_v62 = vmul.f32 %v1902_v52, %v508_v59  ;;  %v515_v63 = vmul.f32 %v1904_v60, %v503_v53  ;;  %vm521_vm7 = vweird.f32 %v1904_v60 }
 0x140   : > { %1905 = vrsqrt.f32 %v592_v61  ;;  %vm522_vm9 = vmor %vm520_vm8, %vm521_vm7  ;;  %vm599_vm11 = vweird.f32 %v592_v61 }
 0x141   : > { %v513_v2 = vsel %vm512_vm6, %v1902_v52, %v509_v62  ;;  %v516_v3 = vmul.f32 %v1904_v60, %v515_v63 }
 0x142   : > { %v524_v4 = vmul.f32 %v513_v2, %v2438_v21  ;;  %v2474_v21 = vld [vmem:[#allocation12 + $0x3] ss:$0 sm:$0xff] }
 0x143   : > { %v517_v6 = vmul.f32 0.5, %v516_v3 }
 0x144   : > { %v527_v7 = vmul.f32 %v1885_v0, %v524_v4 }
 0x145   : > { %v518_v8 = vsub.f32 1.5, %v517_v6 }
 0x146   : > { %v1906_v9 = vpop.eup %1905  ;;  %v530_v10 = vadd.f32 %v1886_v5, %v527_v7 }
 0x147   : > { %v519_v11 = vmul.f32 %v1904_v60, %v518_v8  ;;  %v594_v12 = vmul.f32 %v1906_v9, %v592_v61  ;;  %vm600_vm10 = vweird.f32 %v1906_v9 }
 0x148   : > { %1741 = vmatmul.msk.f32.vlgmr.msra.gmra.mxu0 %vm474_vm0, %v530_v10  ;;  %vm601_vm12 = vmor %vm599_vm11, %vm600_vm10 }
 0x149   : > { %v523_v13 = vsel %vm522_vm9, %v1904_v60, %v519_v11  ;;  %v595_v14 = vmul.f32 %v1906_v9, %v594_v12  ;;  %v2554_v12 = vld [vmem:[#allocation7 + $0x18] sm:$0xff] }
 0x14a   : > { %v525_v15 = vmul.f32 %v523_v13, %v2446_v29  ;;  %v2490_v29 = vld [vmem:[%s2757_s5 + $0x10] sm:$0xff] }
 0x14b   : > { %v596_v16 = vmul.f32 0.5, %v595_v14  ;;  %789 = vmatpush.msrb.mxu1 %v2490_v29  ;;  %v2556_v13 = vld [vmem:[#allocation7 + $0x10] sm:$0xff]  ;;  %v2559_v14 = vld [vmem:[#allocation7 + $0x8] sm:$0xff] }
 0x14c   : > { %v528_v17 = vmul.f32 %v1885_v0, %v525_v15  ;;  %v2562_v15 = vld [vmem:[#allocation7] sm:$0xff] }
 0x14d   : > { %v597_v18 = vsub.f32 1.5, %v596_v16 }
 0x14e   : > { %v531_v19 = vadd.f32 %v1886_v5, %v528_v17 }
 0x14f   : > { %v598_v20 = vmul.f32 %v1906_v9, %v597_v18 }
 0x150   : > { %1742 = vmatmul.msk.f32.gmra.mxu0 %vm474_vm0, %v531_v19 }
 0x151   : > { %v602_v22 = vsel %vm601_vm12, %v1906_v9, %v598_v20 }
 0x152   : > { %v603_v24 = vmul.f32 %v602_v22, %v2449_v30  ;;  %v2496_v30 = vld [vmem:[%s2757_s5 + $0x8] sm:$0xff] }
 0x153   : > { %790 = vmatpush.msrb.mxu1 %v2496_v30 }
 0x154   : > { %v605_v26 = vmul.f32 %v2474_v21, %v603_v24 }
 0x155   : > { %791 = vmatpush.msrb.mxu1 %v2502_v31 }
 0x156   : > { %v607_v27 = vadd.f32 %v2477_v25, %v605_v26 }
 0x158   : > { %1743 = vmatmul.msk.f32.vlgmr.msra.gmra.mxu1 %vm614_vm13, %v607_v27 }
 0x159   : > { %1007 = vmatpush.msra.mxu1 %v2457_v46 }
 0x15b   : > { %1008 = vmatpush.msra.mxu1 %v2460_v47 }
 0x15d   : > { %1009 = vmatpush.msra.mxu1 %v2462_v48 }
 0x15f   : > { %1010 = vmatpush.msra.mxu1 %v2465_v51 }
 0x160   : > { %1749 = vmatmul.msk.f32.vlgmr.msrb.gmra.mxu1 %vm614_vm13, %v2432_v1 }
 0x1c5   : > { %v565_v32 = vpop.f32.mrf.mxu0 }
 0x1c6   : > { %v2511_v35 = vadd.f32 %v1889_v33, %v565_v32 }
 0x1cd   : > { %v568_v34 = vpop.f32.mrf.mxu0 }
 0x1ce   : > { %v2513_v36 = vadd.f32 %v1889_v33, %v568_v34 }
 0x1d0   : > { %1744 = vmatpush.xpose.msk.msra.mxu2 %vm614_vm13, %v2513_v36  ;;  %v1880_v37 = vpack.i.bf16 %v2511_v35, %v2513_v36 }
 0x1d2   : > { %1881 = vrot.lane.b32.xlu1 %v1880_v37, %s2221_s24  ;;  %v2569_v37 = vld [vmem:[#allocation12 + $0x7] ss:$0 sm:$0xff] }
 0x1d4   : > { %1745 = vmatpush.xpose.msk.msra.mxu2 %vm614_vm13, %v2511_v35 }
 0x1d5   : > { %v635_v41 = vpop.f32.mrf.mxu1 }
 0x1d6   : > { %v636_v42 = vadd.f32 %v2521_v38, %v635_v41 }
 0x1d8   : > { %905 = vmatpush.msrb.mxu2 %v2523_v39  ;;  %v638_v44 = vmul.f32 0.17677669, %v636_v42 }
 0x1da   : > { %906 = vmatpush.msrb.mxu2 %v2527_v40  ;;  %833 = vrot.lane.b32.xlu1 %v2432_v1, %s2222_s26 }
 0x1db   : > { %1746 = vmatmul.msk.f32.vlgmr.msra.gmra.mxu2 %vm614_vm13, %v638_v44 }
 0x1dc   : > { %907 = vmatpush.msrb.mxu2 %v2531_v43 }
 0x1dd   : > { %v793_v41 = vpop.f32.mrf.mxu1 }
 0x1de   : > { %908 = vmatpush.msrb.mxu2 %v2534_v45  ;;  %v794_v42 = vadd.f32 %v2569_v37, %v793_v41 }
 0x1e0   : > { %1753 = vmatpush.xpose.msk.msra.mxu2 %vm614_vm13, %v2513_v36  ;;  %817 = vrot.lane.b32.xlu2 %v794_v42, %s2223_s14 }
 0x1e4   : > { %1754 = vmatpush.xpose.msk.msra.mxu2 %vm614_vm13, %v2511_v35 }
 0x244   : > { %v1882_v49 = vpop.permute.xlu1 %1881 }
 0x245   : > { %v2543_v50 = vunpack.i.l.bf16 %v1882_v49  ;;  %v2545_v52 = vunpack.i.h.bf16 %v1882_v49  ;;  %v2574_v49 = vld [vmem:[#allocation12 + $0x6] ss:$0 sm:$0xff] }
 0x247   : > { %732 = vmatpush.msra.mxu3 %v2543_v50  ;;  %1095 = vmatpush.msrb.mxu1 %v2543_v50 }
 0x249   : > { %733 = vmatpush.msra.mxu3 %v2545_v52  ;;  %1096 = vmatpush.msrb.mxu1 %v2545_v52 }
 0x24b   : > { %759 = vmatpush.msrb.mxu3 %v2554_v12 }
 0x24d   : > { %760 = vmatpush.msrb.mxu3 %v2556_v13 }
 0x24f   : > { %761 = vmatpush.msrb.mxu3 %v2559_v14 }
 0x251   : > { %762 = vmatpush.msrb.mxu3 %v2562_v15 }
 0x25e   : > { %v665_v53 = vpop.f32.mrf.mxu2 }
 0x25f   : > { %v669_v54 = vsel %vm668_vm14, %v665_v53, -inf }
 0x260   : > { %v670_v55 = vrot.slane %v669_v54, 4 }
 0x262   : > { %v671_v56 = vmax.f32 %v669_v54, %v670_v55 }
 0x264   : > { %v672_v57 = vrot.slane %v671_v56, 2 }
 0x266   : > { %v673_v58 = vmax.f32 %v671_v56, %v672_v57 }
 0x268   : > { %v674_v59 = vrot.slane %v673_v58, 1 }
 0x26a   : > { %v675_v60 = vmax.f32 %v673_v58, %v674_v59 }
 0x26c   : > { %v676_v61 = vsub.f32 %v665_v53, %v675_v60 }
 0x26e   : > { %v677_v62 = vmul.f32 1.442695, %v676_v61 }
 0x270   : > { %1907 = vpow2.f32 %v677_v62 }
 0x276   : > { %v1908_v63 = vpop.eup %1907 }
 0x277   : > { %v679_v0 = vsel %vm668_vm14, %v1908_v63, 0.0 }
 0x278   : > { %v680_v2 = vrot.slane %v679_v0, 4 }
 0x27a   : > { %v681_v3 = vadd.f32 %v680_v2, %v679_v0 }
 0x27c   : > { %v682_v4 = vrot.slane %v681_v3, 2 }
 0x27e   : > { %v683_v5 = vadd.f32 %v682_v4, %v681_v3  ;;  %v818_v3 = vpop.permute.xlu2 %817 }
 0x280   : > { %v684_v6 = vrot.slane %v683_v5, 1 }
 0x282   : > { %v685_v7 = vadd.f32 %v684_v6, %v683_v5 }
 0x284   : > { %1909 = vrcp.f32 %v685_v7 }
 0x28a   : > { %v1910_v8 = vpop.eup %1909 }
 0x28b   : > { %v687_v9 = vmul.f32 %v1910_v8, %v1908_v63 }
 0x28d   : > { %v688_v10 = vadd.f32 1e-08, %v687_v9 }
 0x28f   : > { %v689_v11 = vsel %vm668_vm14, %v688_v10, 0.0 }
 0x290   : > { %690 = vadd.xlane.f32.xlu0 %v689_v11 }
 0x303   : > { %v691_v16 = vpop.xlane.xlu0 %690 }
 0x304   : > { %1911 = vrcp.f32 %v691_v16  ;;  %v703_v20 = vand.u32 2147483648, %v691_v16  ;;  %v701_v24 = vand.u32 2147483647, %v691_v16  ;;  %vm697_vm0 = vweird.f32 %v691_v16 }
 0x306   : > { %v704_v27 = vor.u32 1.1754944e-38, %v703_v20  ;;  %vm702_vm3 = vcmp.eq.f32.partialorder %v701_v24, 8.507059e+37 }
 0x30a   : > { %v1912_v17 = vpop.eup %1911 }
 0x30b   : > { %v693_v18 = vmul.f32 %v1912_v17, %v691_v16  ;;  %vm698_vm15 = vweird.f32 %v1912_v17 }
 0x30c   : > { %vm699_vm2 = vmor %vm697_vm0, %vm698_vm15 }
 0x30d   : > { %v694_v19 = vsub.f32 1.0, %v693_v18 }
 0x30f   : > { %v695_v22 = vmul.f32 %v1912_v17, %v694_v19 }
 0x311   : > { %v696_v26 = vadd.f32 %v1912_v17, %v695_v22 }
 0x313   : > { %v700_v32 = vsel %vm699_vm2, %v1912_v17, %v696_v26 }
 0x314   : > { %v705_v33 = vsel %vm702_vm3, %v704_v27, %v700_v32 }
 0x315   : > { %v707_v34 = vmul.f32 %v705_v33, %v688_v10  ;;  %v834_v10 = vpop.permute.xlu1 %833  ;;  %v1893_v33 = vld [vmem:[#allocation12 + $0x8] ss:$0 sm:$0xff] }
 0x317   : > { %1747 = vmatmul.msk.f32.vlgmr.msra.gmra.mxu3 %vm714_vm4, %v707_v34  ;;  %v1894_v34 = vld [vmem:[#allocation12 + $0x9] ss:$0 sm:$0xff] }
 0x39a   : > { %v735_v44 = vpop.f32.mrf.mxu3 }
 0x39b   : > { %1748 = vmatmul.msk.f32.vlgmr.msrb.gmra.mxu3 %vm614_vm13, %v735_v44 }
 0x41e   : > { %v764_v53 = vpop.f32.mrf.mxu3 }
 0x41f   : > { %v765_v54 = vadd.f32 %v2574_v49, %v764_v53 }
 0x421   : > { %v796_v55 = vadd.f32 %v794_v42, %v765_v54 }
 0x423   : > { %v1750_v56 = vmul.f32 -1.442695, %v796_v55 }
 0x425   : > { %1913 = vpow2.f32 %v1750_v56 }
 0x42b   : > { %v1914_v1 = vpop.eup %1913 }
 0x42c   : > { %v800_v57 = vadd.f32 1.0, %v1914_v1 }
 0x42e   : > { %1915 = vrcp.f32 %v800_v57  ;;  %v812_v61 = vand.u32 2147483648, %v800_v57  ;;  %v810_v63 = vand.u32 2147483647, %v800_v57  ;;  %vm806_vm6 = vweird.f32 %v800_v57 }
 0x430   : > { %v813_v2 = vor.u32 1.1754944e-38, %v812_v61  ;;  %vm811_vm8 = vcmp.eq.f32.partialorder %v810_v63, 8.507059e+37 }
 0x434   : > { %v1916_v58 = vpop.eup %1915 }
 0x435   : > { %v802_v59 = vmul.f32 %v1916_v58, %v800_v57  ;;  %vm807_vm5 = vweird.f32 %v1916_v58 }
 0x436   : > { %vm808_vm7 = vmor %vm806_vm6, %vm807_vm5 }
 0x437   : > { %v803_v60 = vsub.f32 1.0, %v802_v59 }
 0x439   : > { %v804_v62 = vmul.f32 %v1916_v58, %v803_v60 }
 0x43b   : > { %v805_v0 = vadd.f32 %v1916_v58, %v804_v62 }
 0x43d   : > { %v809_v4 = vsel %vm808_vm7, %v1916_v58, %v805_v0 }
 0x43e   : > { %v814_v5 = vsel %vm811_vm8, %v813_v2, %v809_v4  ;;  %v916_v4 = vld [vmem:[#allocation10 + $0x10] sm:$0xff] }
 0x43f   : > { %v820_v6 = vmul.f32 %v818_v3, %v814_v5  ;;  %v827_v11 = vsub.f32 1.0, %v814_v5  ;;  %v836_v17 = vmul.f32 %v834_v10, %v814_v5  ;;  %v917_v3 = vld [vmem:[#allocation10 + $0x18] sm:$0xff]  ;;  %v915_v5 = vld [vmem:[#allocation10 + $0x8] sm:$0xff] }
 0x440   : > { %930 = vmatpush.xpose.msra.mxu3 %v917_v3  ;;  %1255 = vmatpush.xpose.msrb.mxu0 %v917_v3 }
 0x441   : > { %822 = vrot.lane.b32.xlu0 %v820_v6, %s2223_s14  ;;  %v914_v6 = vld [vmem:[#allocation10] sm:$0xff] }
 0x444   : > { %931 = vmatpush.xpose.msra.mxu3 %v916_v4  ;;  %1256 = vmatpush.xpose.msrb.mxu0 %v916_v4 }
 0x448   : > { %932 = vmatpush.xpose.msra.mxu3 %v915_v5  ;;  %1257 = vmatpush.xpose.msrb.mxu0 %v915_v5 }
 0x44c   : > { %933 = vmatpush.xpose.msra.mxu3 %v914_v6  ;;  %1258 = vmatpush.xpose.msrb.mxu0 %v914_v6 }
 0x450   : > { %1234 = vmatpush.msrb.mxu3 %v2523_v39  ;;  %1566 = vmatpush.xpose.msra.mxu0 %v917_v3 }
 0x452   : > { %1235 = vmatpush.msrb.mxu3 %v2527_v40 }
 0x454   : > { %1236 = vmatpush.msrb.mxu3 %v2531_v43  ;;  %1567 = vmatpush.xpose.msra.mxu0 %v916_v4 }
 0x456   : > { %1237 = vmatpush.msrb.mxu3 %v2534_v45 }
 0x458   : > { %1568 = vmatpush.xpose.msra.mxu0 %v915_v5 }
 0x45c   : > { %1569 = vmatpush.xpose.msra.mxu0 %v914_v6 }
 0x4b3   : > { %v823_v7 = vpop.permute.xlu0 %822 }
 0x4b4   : > { %v825_v8 = vadd.f32 %v823_v7, %v765_v54 }
 0x4b6   : > { %1917 = vtanh.f32 %v825_v8  ;;  %v2607_v8 = vld [vmem:[#allocation12 + $0xa] ss:$0 sm:$0xff] }
 0x4bc   : > { %v1918_v9 = vpop.eup %1917 }
 0x4bd   : > { %829 = vrot.lane.b32.xlu2 %v1918_v9, %s2221_s24 }
 0x517   : > { %v830_v16 = vpop.permute.xlu2 %829 }
 0x518   : > { %v832_v18 = vmul.f32 %v830_v16, %v827_v11 }
 0x51a   : > { %v2579_v19 = vadd.f32 %v836_v17, %v832_v18  ;;  %v1896_v17 = vld [vmem:[#allocation12 + $0xb] ss:$0 sm:$0xff] }
 0x51c   : > { %841 = vrot.lane.b32.xlu0 %v2579_v19, %s2221_s24 }
 0x58e   : > { %v842_v20 = vpop.permute.xlu0 %841 }
 0x58f   : > { %v844_v22 = vsel %vm574_vm1, %v842_v20, 0.0 }
 0x590   : > { %845 = vadd.xlane.f32.xlu2 %v844_v22 }
 0x603   : > { %v846_v24 = vpop.xlane.xlu2 %845 }
 0x604   : > { %v847_v26 = vmul.f32 %v846_v24, %v2442_v23 }
 0x606   : > { %v848_v27 = vsub.f32 %v2579_v19, %v847_v26 }
 0x608   : > { %v849_v32 = vmul.f32 %v848_v27, %v848_v27 }
 0x60a   : > { %851 = vrot.lane.b32.xlu1 %v849_v32, %s2221_s24 }
 0x612   : > { %872 = vrot.lane.b32.xlu1 %v1893_v33, %s2222_s26 }
 0x61a   : > { %878 = vrot.lane.b32.xlu1 %v1894_v34, %s2222_s26 }
 0x67c   : > { %v852_v41 = vpop.permute.xlu1 %851 }
 0x67d   : > { %v854_v42 = vsel %vm574_vm1, %v852_v41, 0.0 }
 0x67e   : > { %855 = vadd.xlane.f32.xlu0 %v854_v42 }
 0x684   : > { %v2591_v57 = vpop.permute.xlu1 %872 }
 0x68c   : > { %v2593_v63 = vpop.permute.xlu1 %878 }
 0x6f1   : > { %v856_v44 = vpop.xlane.xlu0 %855 }
 0x6f2   : > { %v857_v53 = vmul.f32 %v856_v44, %v2442_v23 }
 0x6f4   : > { %v858_v54 = vadd.f32 1e-05, %v857_v53 }
 0x6f6   : > { %1919 = vrsqrt.f32 %v858_v54  ;;  %vm865_vm10 = vweird.f32 %v858_v54 }
 0x6fc   : > { %v1920_v55 = vpop.eup %1919 }
 0x6fd   : > { %v860_v56 = vmul.f32 %v1920_v55, %v858_v54  ;;  %vm866_vm9 = vweird.f32 %v1920_v55 }
 0x6fe   : > { %vm867_vm11 = vmor %vm865_vm10, %vm866_vm9 }
 0x6ff   : > { %v861_v1 = vmul.f32 %v1920_v55, %v860_v56 }
 0x701   : > { %v862_v58 = vmul.f32 0.5, %v861_v1 }
 0x703   : > { %v863_v59 = vsub.f32 1.5, %v862_v58 }
 0x705   : > { %v864_v60 = vmul.f32 %v1920_v55, %v863_v59 }
 0x707   : > { %v868_v61 = vsel %vm867_vm11, %v1920_v55, %v864_v60 }
 0x708   : > { %v869_v62 = vmul.f32 %v868_v61, %v848_v27 }
 0x70a   : > { %v875_v0 = vmul.f32 %v2591_v57, %v869_v62 }
 0x70c   : > { %v881_v2 = vadd.f32 %v2593_v63, %v875_v0 }
 0x70e   : > { %889 = vrot.lane.b32.xlu1 %v881_v2, %s2221_s24 }
 0x780   : > { %v890_v7 = vpop.permute.xlu1 %889 }
 0x781   : > { %1751 = vmatmul.msk.f32.vlgmr.msrb.gmra.mxu2 %vm614_vm13, %v890_v7 }
 0x782   : > { %1138 = vmatpush.msrb.mxu2 %v2485_v28 }
 0x784   : > { %1139 = vmatpush.msrb.mxu2 %v2490_v29 }
 0x786   : > { %1140 = vmatpush.msrb.mxu2 %v2496_v30 }
 0x788   : > { %1141 = vmatpush.msrb.mxu2 %v2502_v31 }
 0x804   : > { %v910_v9 = vpop.f32.mrf.mxu2 }
 0x805   : > { %v911_v10 = vadd.f32 %v2607_v8, %v910_v9 }
 0x807   : > { %v913_v11 = vmax.f32 %v911_v10, 0.0 }
 0x809   : > { %934 = vmatmul.f32.vlgmr.msra.gmra.mxu3 %v913_v11 }
 0x80a   : > { %1406 = vmatpush.msra.mxu3 %v2543_v50 }
 0x80c   : > { %1407 = vmatpush.msra.mxu3 %v2545_v52 }
 0x88c   : > { %v935_v16 = vpop.f32.mrf.mxu3 }
 0x88d   : > { %939 = vrot.lane.b32.xlu1 %v935_v16, %s2222_s26 }
 0x895   : > { %946 = vrot.lane.b32.xlu1 %v1896_v17, %s2222_s26 }
 0x8ff   : > { %v940_v18 = vpop.permute.xlu1 %939 }
 0x900   : > { %v942_v20 = vadd.f32 %v940_v18, %v2579_v19 }
 0x907   : > { %v2615_v22 = vpop.permute.xlu1 %946 }
 0x908   : > { %v2618_v24 = vadd.f32 %v2615_v22, %v942_v20 }
 0x90a   : > { %951 = vrot.lane.b32.xlu2 %v2618_v24, %s2221_s24 }
 0x964   : > { %v952_v50 = vpop.permute.xlu2 %951 }
 0x965   : > { %v954_v52 = vsel %vm574_vm1, %v952_v50, 0.0 }
 0x966   : > { %955 = vadd.xlane.f32.xlu0 %v954_v52 }
 0x9d9   : > { %v956_v26 = vpop.xlane.xlu0 %955 }
 0x9da   : > { %v957_v27 = vmul.f32 %v956_v26, %v2442_v23 }
 0x9dc   : > { %v958_v32 = vsub.f32 %v2618_v24, %v957_v27 }
 0x9de   : > { %v959_v33 = vmul.f32 %v958_v32, %v958_v32 }
 0x9e0   : > { %961 = vrot.lane.b32.xlu1 %v959_v33, %s2221_s24 }
 0x9e8   : > { %981 = vrot.lane.b32.xlu1 %v2474_v21, %s2222_s26 }
 0xa52   : > { %v962_v19 = vpop.permute.xlu1 %961 }
 0xa53   : > { %v964_v34 = vsel %vm574_vm1, %v962_v19, 0.0 }
 0xa54   : > { %965 = vadd.xlane.f32.xlu0 %v964_v34 }
 0xa5a   : > { %v2632_v59 = vpop.permute.xlu1 %981 }
 0xa68   : > { %986 = vrot.lane.b32.xlu0 %v2477_v25, %s2222_s26 }
 0xac7   : > { %v966_v41 = vpop.xlane.xlu0 %965 }
 0xac8   : > { %v967_v42 = vmul.f32 %v966_v41, %v2442_v23 }
 0xaca   : > { %v968_v44 = vadd.f32 1e-05, %v967_v42 }
 0xacc   : > { %1921 = vrsqrt.f32 %v968_v44  ;;  %vm975_vm15 = vweird.f32 %v968_v44 }
 0xad2   : > { %v1922_v53 = vpop.eup %1921 }
 0xad3   : > { %v970_v54 = vmul.f32 %v1922_v53, %v968_v44  ;;  %vm976_vm12 = vweird.f32 %v1922_v53 }
 0xad4   : > { %vm977_vm0 = vmor %vm975_vm15, %vm976_vm12 }
 0xad5   : > { %v971_v55 = vmul.f32 %v1922_v53, %v970_v54 }
 0xad7   : > { %v972_v56 = vmul.f32 0.5, %v971_v55 }
 0xad9   : > { %v973_v1 = vsub.f32 1.5, %v972_v56 }
 0xada   : > { %v2634_v61 = vpop.permute.xlu0 %986 }
 0xadb   : > { %v974_v21 = vmul.f32 %v1922_v53, %v973_v1 }
 0xadd   : > { %v978_v58 = vsel %vm977_vm0, %v1922_v53, %v974_v21 }
 0xade   : > { %v979_v60 = vmul.f32 %v978_v58, %v958_v32 }
 0xae0   : > { %v984_v25 = vmul.f32 %v2632_v59, %v979_v60 }
 0xae2   : > { %v989_v62 = vadd.f32 %v2634_v61, %v984_v25 }
 0xae4   : > { %991 = vrot.lane.b32.xlu1 %v989_v62, %s2221_s24 }
 0xb56   : > { %v992_v0 = vpop.permute.xlu1 %991 }
 0xb57   : > { %1752 = vmatmul.msk.f32.vlgmr.msra.gmra.mxu1 %vm614_vm13, %v992_v0 }
 0xb58   : > { %1116 = vmatpush.msra.mxu1 %v2554_v12 }
 0xb5a   : > { %1117 = vmatpush.msra.mxu1 %v2556_v13 }
 0xb5c   : > { %1118 = vmatpush.msra.mxu1 %v2559_v14 }
 0xb5e   : > { %1119 = vmatpush.msra.mxu1 %v2562_v15 }
 0xbd4   : > { %v1012_v2 = vpop.f32.mrf.mxu1 }
 0xbd5   : > { %v1013_v3 = vadd.f32 %v2521_v38, %v1012_v2 }
 0xbd7   : > { %v1015_v4 = vmul.f32 0.17677669, %v1013_v3 }
 0xbd9   : > { %1755 = vmatmul.msk.f32.vlgmr.msra.gmra.mxu2 %vm614_vm13, %v1015_v4 }
 0xbda   : > { %1762 = vmatpush.xpose.msk.msra.mxu2 %vm614_vm13, %v2513_v36 }
 0xbde   : > { %1763 = vmatpush.xpose.msk.msra.mxu2 %vm614_vm13, %v2511_v35 }
 0xbe1   : > { %1758 = vmatmul.msk.f32.vlgmr.msrb.gmra.mxu2 %vm614_vm13, %v952_v50 }
 0xbe2   : > { %1449 = vmatpush.msrb.mxu2 %v2485_v28 }
 0xbe4   : > { %1450 = vmatpush.msrb.mxu2 %v2490_v29 }
 0xbe6   : > { %1451 = vmatpush.msrb.mxu2 %v2496_v30 }
 0xbe8   : > { %1452 = vmatpush.msrb.mxu2 %v2502_v31 }
 0xc5c   : > { %v1036_v5 = vpop.f32.mrf.mxu2 }
 0xc5d   : > { %v1039_v6 = vsel %vm668_vm14, %v1036_v5, -inf }
 0xc5e   : > { %v1040_v7 = vrot.slane %v1039_v6, 4 }
 0xc60   : > { %v1041_v9 = vmax.f32 %v1039_v6, %v1040_v7 }
 0xc62   : > { %v1042_v10 = vrot.slane %v1041_v9, 2 }
 0xc64   : > { %v1043_v36 = vmax.f32 %v1041_v9, %v1042_v10  ;;  %v1143_v11 = vpop.f32.mrf.mxu2 }
 0xc65   : > { %v1144_v35 = vadd.f32 %v2569_v37, %v1143_v11 }
 0xc66   : > { %v1044_v16 = vrot.slane %v1043_v36, 1 }
 0xc67   : > { %1167 = vrot.lane.b32.xlu1 %v1144_v35, %s2223_s14 }
 0xc68   : > { %v1045_v28 = vmax.f32 %v1043_v36, %v1044_v16 }
 0xc6a   : > { %v1046_v17 = vsub.f32 %v1036_v5, %v1045_v28 }
 0xc6c   : > { %v1047_v29 = vmul.f32 1.442695, %v1046_v17 }
 0xc6e   : > { %1923 = vpow2.f32 %v1047_v29 }
 0xc74   : > { %v1924_v30 = vpop.eup %1923 }
 0xc75   : > { %v1049_v31 = vsel %vm668_vm14, %v1924_v30, 0.0 }
 0xc76   : > { %v1050_v18 = vrot.slane %v1049_v31, 4 }
 0xc78   : > { %v1051_v20 = vadd.f32 %v1050_v18, %v1049_v31 }
 0xc7a   : > { %v1052_v50 = vrot.slane %v1051_v20, 2 }
 0xc7c   : > { %v1053_v52 = vadd.f32 %v1052_v50, %v1051_v20 }
 0xc7e   : > { %v1054_v26 = vrot.slane %v1053_v52, 1 }
 0xc80   : > { %v1055_v27 = vadd.f32 %v1054_v26, %v1053_v52 }
 0xc82   : > { %1925 = vrcp.f32 %v1055_v27 }
 0xc88   : > { %v1926_v32 = vpop.eup %1925 }
 0xc89   : > { %v1057_v33 = vmul.f32 %v1926_v32, %v1924_v30 }
 0xc8b   : > { %v1058_v19 = vadd.f32 1e-08, %v1057_v33 }
 0xc8d   : > { %v1059_v34 = vsel %vm668_vm14, %v1058_v19, 0.0 }
 0xc8e   : > { %1060 = vadd.xlane.f32.xlu2 %v1059_v34 }
 0xcd9   : > { %v1168_v9 = vpop.permute.xlu1 %1167 }
 0xd01   : > { %v1061_v41 = vpop.xlane.xlu2 %1060 }
 0xd02   : > { %1927 = vrcp.f32 %v1061_v41  ;;  %v1073_v54 = vand.u32 2147483648, %v1061_v41  ;;  %v1071_v56 = vand.u32 2147483647, %v1061_v41  ;;  %vm1067_vm3 = vweird.f32 %v1061_v41 }
 0xd04   : > { %v1074_v21 = vor.u32 1.1754944e-38, %v1073_v54  ;;  %vm1072_vm6 = vcmp.eq.f32.partialorder %v1071_v56, 8.507059e+37 }
 0xd08   : > { %v1928_v42 = vpop.eup %1927 }
 0xd09   : > { %v1063_v44 = vmul.f32 %v1928_v42, %v1061_v41  ;;  %vm1068_vm2 = vweird.f32 %v1928_v42 }
 0xd0a   : > { %vm1069_vm5 = vmor %vm1067_vm3, %vm1068_vm2 }
 0xd0b   : > { %v1064_v53 = vsub.f32 1.0, %v1063_v44 }
 0xd0d   : > { %v1065_v55 = vmul.f32 %v1928_v42, %v1064_v53 }
 0xd0f   : > { %v1066_v1 = vadd.f32 %v1928_v42, %v1065_v55 }
 0xd11   : > { %v1070_v58 = vsel %vm1069_vm5, %v1928_v42, %v1066_v1 }
 0xd12   : > { %v1075_v60 = vsel %vm1072_vm6, %v1074_v21, %v1070_v58 }
 0xd13   : > { %v1077_v25 = vmul.f32 %v1075_v60, %v1058_v19 }
 0xd15   : > { %1756 = vmatmul.msk.f32.vlgmr.msrb.gmra.mxu1 %vm714_vm4, %v1077_v25 }
 0xd16   : > { %1318 = vmatpush.msrb.mxu1 %v2457_v46 }
 0xd18   : > { %1319 = vmatpush.msrb.mxu1 %v2460_v47 }
 0xd1a   : > { %1320 = vmatpush.msrb.mxu1 %v2462_v48 }
 0xd1c   : > { %1321 = vmatpush.msrb.mxu1 %v2465_v51 }
 0xd92   : > { %v1098_v62 = vpop.f32.mrf.mxu1 }
 0xd93   : > { %1757 = vmatmul.msk.f32.vlgmr.msra.gmra.mxu1 %vm614_vm13, %v1098_v62 }
 0xd94   : > { %1427 = vmatpush.msra.mxu1 %v2554_v12 }
 0xd96   : > { %1428 = vmatpush.msra.mxu1 %v2556_v13 }
 0xd98   : > { %1429 = vmatpush.msra.mxu1 %v2559_v14 }
 0xd9a   : > { %1430 = vmatpush.msra.mxu1 %v2562_v15 }
 0xe10   : > { %v1121_v0 = vpop.f32.mrf.mxu1 }
 0xe11   : > { %v1122_v46 = vadd.f32 %v2574_v49, %v1121_v0 }
 0xe13   : > { %v1146_v2 = vadd.f32 %v1144_v35, %v1122_v46 }
 0xe15   : > { %v1759_v47 = vmul.f32 -1.442695, %v1146_v2 }
 0xe17   : > { %1929 = vpow2.f32 %v1759_v47 }
 0xe1d   : > { %v1930_v48 = vpop.eup %1929 }
 0xe1e   : > { %v1150_v3 = vadd.f32 1.0, %v1930_v48 }
 0xe20   : > { %1931 = vrcp.f32 %v1150_v3  ;;  %v1162_v6 = vand.u32 2147483648, %v1150_v3  ;;  %v1160_v13 = vand.u32 2147483647, %v1150_v3  ;;  %vm1156_vm8 = vweird.f32 %v1150_v3 }
 0xe22   : > { %v1163_v14 = vor.u32 1.1754944e-38, %v1162_v6  ;;  %vm1161_vm10 = vcmp.eq.f32.partialorder %v1160_v13, 8.507059e+37 }
 0xe26   : > { %v1932_v51 = vpop.eup %1931 }
 0xe27   : > { %v1152_v4 = vmul.f32 %v1932_v51, %v1150_v3  ;;  %vm1157_vm7 = vweird.f32 %v1932_v51 }
 0xe28   : > { %vm1158_vm9 = vmor %vm1156_vm8, %vm1157_vm7 }
 0xe29   : > { %v1153_v5 = vsub.f32 1.0, %v1152_v4 }
 0xe2b   : > { %v1154_v12 = vmul.f32 %v1932_v51, %v1153_v5 }
 0xe2d   : > { %v1155_v7 = vadd.f32 %v1932_v51, %v1154_v12 }
 0xe2f   : > { %v1159_v15 = vsel %vm1158_vm9, %v1932_v51, %v1155_v7 }
 0xe30   : > { %v1164_v10 = vsel %vm1161_vm10, %v1163_v14, %v1159_v15 }
 0xe31   : > { %v1170_v36 = vmul.f32 %v1168_v9, %v1164_v10  ;;  %v1177_v28 = vsub.f32 1.0, %v1164_v10  ;;  %v1183_v29 = vmul.f32 %v1164_v10, %v2618_v24 }
 0xe33   : > { %1172 = vrot.lane.b32.xlu1 %v1170_v36, %s2223_s14 }
 0xea5   : > { %v1173_v11 = vpop.permute.xlu1 %1172 }
 0xea6   : > { %v1175_v35 = vadd.f32 %v1173_v11, %v1122_v46 }
 0xea8   : > { %1933 = vtanh.f32 %v1175_v35 }
 0xeae   : > { %v1934_v16 = vpop.eup %1933 }
 0xeaf   : > { %1179 = vrot.lane.b32.xlu0 %v1934_v16, %s2221_s24 }
 0xf21   : > { %v1180_v17 = vpop.permute.xlu0 %1179 }
 0xf22   : > { %v1182_v30 = vmul.f32 %v1180_v17, %v1177_v28 }
 0xf24   : > { %v1184_v31 = vadd.f32 %v1183_v29, %v1182_v30 }
 0xf26   : > { %1186 = vrot.lane.b32.xlu1 %v1184_v31, %s2221_s24 }
 0xf98   : > { %v1187_v18 = vpop.permute.xlu1 %1186 }
 0xf99   : > { %v1189_v20 = vsel %vm574_vm1, %v1187_v18, 0.0 }
 0xf9a   : > { %1190 = vadd.xlane.f32.xlu0 %v1189_v20 }
0x100d   : > { %v1191_v50 = vpop.xlane.xlu0 %1190 }
0x100e   : > { %v1192_v52 = vmul.f32 %v1191_v50, %v2442_v23 }
0x1010   : > { %v1193_v26 = vsub.f32 %v1184_v31, %v1192_v52 }
0x1012   : > { %v1194_v27 = vmul.f32 %v1193_v26, %v1193_v26 }
0x1014   : > { %1196 = vrot.lane.b32.xlu1 %v1194_v27, %s2221_s24 }
0x1086   : > { %v1197_v32 = vpop.permute.xlu1 %1196 }
0x1087   : > { %v1199_v33 = vsel %vm574_vm1, %v1197_v32, 0.0 }
0x1088   : > { %1200 = vadd.xlane.f32.xlu1 %v1199_v33 }
0x10fb   : > { %v1201_v24 = vpop.xlane.xlu1 %1200 }
0x10fc   : > { %v1202_v19 = vmul.f32 %v1201_v24, %v2442_v23 }
0x10fe   : > { %v1203_v34 = vadd.f32 1e-05, %v1202_v19 }
0x1100   : > { %1935 = vrsqrt.f32 %v1203_v34  ;;  %vm1210_vm12 = vweird.f32 %v1203_v34 }
0x1106   : > { %v1936_v41 = vpop.eup %1935 }
0x1107   : > { %v1205_v42 = vmul.f32 %v1936_v41, %v1203_v34  ;;  %vm1211_vm11 = vweird.f32 %v1936_v41 }
0x1108   : > { %vm1212_vm15 = vmor %vm1210_vm12, %vm1211_vm11 }
0x1109   : > { %v1206_v44 = vmul.f32 %v1936_v41, %v1205_v42 }
0x110b   : > { %v1207_v53 = vmul.f32 0.5, %v1206_v44 }
0x110d   : > { %v1208_v54 = vsub.f32 1.5, %v1207_v53 }
0x110f   : > { %v1209_v55 = vmul.f32 %v1936_v41, %v1208_v54 }
0x1111   : > { %v1213_v56 = vsel %vm1212_vm15, %v1936_v41, %v1209_v55 }
0x1112   : > { %v1214_v1 = vmul.f32 %v1213_v56, %v1193_v26 }
0x1114   : > { %v1215_v21 = vmul.f32 %v1214_v1, %v2591_v57 }
0x1116   : > { %v1216_v58 = vadd.f32 %v1215_v21, %v2593_v63 }
0x1118   : > { %1218 = vrot.lane.b32.xlu2 %v1216_v58, %s2221_s24 }
0x1172   : > { %v1219_v60 = vpop.permute.xlu2 %1218 }
0x1173   : > { %1760 = vmatmul.msk.f32.vlgmr.msrb.gmra.mxu3 %vm614_vm13, %v1219_v60 }
0x1174   : > { %1545 = vmatpush.msrb.mxu3 %v2523_v39 }
0x1176   : > { %1546 = vmatpush.msrb.mxu3 %v2527_v40 }
0x1178   : > { %1547 = vmatpush.msrb.mxu3 %v2531_v43 }
0x117a   : > { %1548 = vmatpush.msrb.mxu3 %v2534_v45 }
0x11f6   : > { %v1239_v25 = vpop.f32.mrf.mxu3 }
0x11f7   : > { %v1240_v62 = vadd.f32 %v2607_v8, %v1239_v25 }
0x11f9   : > { %v1242_v0 = vmax.f32 %v1240_v62, 0.0 }
0x11fb   : > { %1259 = vmatmul.f32.vlgmr.msrb.gmra.mxu0 %v1242_v0 }
0x1278   : > { %v1260_v46 = vpop.f32.mrf.mxu0 }
0x1279   : > { %1264 = vrot.lane.b32.xlu2 %v1260_v46, %s2222_s26 }
0x12d3   : > { %v1265_v2 = vpop.permute.xlu2 %1264 }
0x12d4   : > { %v1267_v47 = vadd.f32 %v1265_v2, %v1184_v31 }
0x12d6   : > { %v2691_v48 = vadd.f32 %v1267_v47, %v2615_v22 }
0x12d8   : > { %1270 = vrot.lane.b32.xlu0 %v2691_v48, %s2221_s24 }
0x134a   : > { %v1271_v39 = vpop.permute.xlu0 %1270 }
0x134b   : > { %v1273_v40 = vsel %vm574_vm1, %v1271_v39, 0.0 }
0x134c   : > { %1274 = vadd.xlane.f32.xlu2 %v1273_v40 }
0x13bf   : > { %v1275_v43 = vpop.xlane.xlu2 %1274 }
0x13c0   : > { %v1276_v45 = vmul.f32 %v1275_v43, %v2442_v23 }
0x13c2   : > { %v1277_v3 = vsub.f32 %v2691_v48, %v1276_v45 }
0x13c4   : > { %v1278_v51 = vmul.f32 %v1277_v3, %v1277_v3 }
0x13c6   : > { %1280 = vrot.lane.b32.xlu1 %v1278_v51, %s2221_s24 }
0x1438   : > { %v1281_v4 = vpop.permute.xlu1 %1280 }
0x1439   : > { %v1283_v5 = vsel %vm574_vm1, %v1281_v4, 0.0 }
0x143a   : > { %1284 = vadd.xlane.f32.xlu0 %v1283_v5 }
0x14ad   : > { %v1285_v6 = vpop.xlane.xlu0 %1284 }
0x14ae   : > { %v1286_v12 = vmul.f32 %v1285_v6, %v2442_v23 }
0x14b0   : > { %v1287_v13 = vadd.f32 1e-05, %v1286_v12 }
0x14b2   : > { %1937 = vrsqrt.f32 %v1287_v13  ;;  %vm1294_vm2 = vweird.f32 %v1287_v13 }
0x14b8   : > { %v1938_v7 = vpop.eup %1937 }
0x14b9   : > { %v1289_v14 = vmul.f32 %v1938_v7, %v1287_v13  ;;  %vm1295_vm0 = vweird.f32 %v1938_v7 }
0x14ba   : > { %vm1296_vm3 = vmor %vm1294_vm2, %vm1295_vm0 }
0x14bb   : > { %v1290_v15 = vmul.f32 %v1938_v7, %v1289_v14 }
0x14bd   : > { %v1291_v9 = vmul.f32 0.5, %v1290_v15 }
0x14bf   : > { %v1292_v10 = vsub.f32 1.5, %v1291_v9 }
0x14c1   : > { %v1293_v36 = vmul.f32 %v1938_v7, %v1292_v10 }
0x14c3   : > { %v1297_v11 = vsel %vm1296_vm3, %v1938_v7, %v1293_v36 }
0x14c4   : > { %v1298_v35 = vmul.f32 %v1297_v11, %v1277_v3 }
0x14c6   : > { %v1299_v16 = vmul.f32 %v1298_v35, %v2632_v59 }
0x14c8   : > { %v1300_v28 = vadd.f32 %v1299_v16, %v2634_v61 }
0x14ca   : > { %1302 = vrot.lane.b32.xlu1 %v1300_v28, %s2221_s24 }
0x153c   : > { %v1303_v17 = vpop.permute.xlu1 %1302 }
0x153d   : > { %1761 = vmatmul.msk.f32.vlgmr.msrb.gmra.mxu1 %vm614_vm13, %v1303_v17 }
0x15ba   : > { %v1323_v29 = vpop.f32.mrf.mxu1 }
0x15bb   : > { %v1324_v30 = vadd.f32 %v2521_v38, %v1323_v29 }
0x15bd   : > { %v1326_v31 = vmul.f32 0.17677669, %v1324_v30 }
0x15bf   : > { %1764 = vmatmul.msk.f32.vlgmr.msra.gmra.mxu2 %vm614_vm13, %v1326_v31 }
0x15c7   : > { %1767 = vmatmul.msk.f32.vlgmr.msrb.gmra.mxu2 %vm614_vm13, %v1271_v39 }
0x1642   : > { %v1347_v18 = vpop.f32.mrf.mxu2 }
0x1643   : > { %v1350_v20 = vsel %vm668_vm14, %v1347_v18, -inf }
0x1644   : > { %v1351_v50 = vrot.slane %v1350_v20, 4 }
0x1646   : > { %v1352_v59 = vmax.f32 %v1350_v20, %v1351_v50 }
0x1648   : > { %v1353_v52 = vrot.slane %v1352_v59, 2 }
0x164a   : > { %v1354_v61 = vmax.f32 %v1352_v59, %v1353_v52  ;;  %v1454_v26 = vpop.f32.mrf.mxu2 }
0x164b   : > { %v1455_v27 = vadd.f32 %v2569_v37, %v1454_v26 }
0x164c   : > { %v1355_v32 = vrot.slane %v1354_v61, 1 }
0x164d   : > { %1478 = vrot.lane.b32.xlu1 %v1455_v27, %s2223_s14 }
0x164e   : > { %v1356_v33 = vmax.f32 %v1354_v61, %v1355_v32 }
0x1650   : > { %v1357_v38 = vsub.f32 %v1347_v18, %v1356_v33 }
0x1652   : > { %v1358_v24 = vmul.f32 1.442695, %v1357_v38 }
0x1654   : > { %1939 = vpow2.f32 %v1358_v24 }
0x165a   : > { %v1940_v19 = vpop.eup %1939 }
0x165b   : > { %v1360_v34 = vsel %vm668_vm14, %v1940_v19, 0.0 }
0x165c   : > { %v1361_v41 = vrot.slane %v1360_v34, 4 }
0x165e   : > { %v1362_v42 = vadd.f32 %v1361_v41, %v1360_v34 }
0x1660   : > { %v1363_v44 = vrot.slane %v1362_v42, 2 }
0x1662   : > { %v1364_v53 = vadd.f32 %v1363_v44, %v1362_v42 }
0x1664   : > { %v1365_v54 = vrot.slane %v1364_v53, 1 }
0x1666   : > { %v1366_v55 = vadd.f32 %v1365_v54, %v1364_v53 }
0x1668   : > { %1941 = vrcp.f32 %v1366_v55 }
0x166e   : > { %v1942_v56 = vpop.eup %1941 }
0x166f   : > { %v1368_v1 = vmul.f32 %v1942_v56, %v1940_v19 }
0x1671   : > { %v1369_v37 = vadd.f32 1e-08, %v1368_v1 }
0x1673   : > { %v1370_v21 = vsel %vm668_vm14, %v1369_v37, 0.0 }
0x1674   : > { %1371 = vadd.xlane.f32.xlu2 %v1370_v21 }
0x16e7   : > { %v1372_v58 = vpop.xlane.xlu2 %1371 }
0x16e8   : > { %1943 = vrcp.f32 %v1372_v58  ;;  %v1384_v0 = vand.u32 2147483648, %v1372_v58  ;;  %v1382_v2 = vand.u32 2147483647, %v1372_v58  ;;  %vm1378_vm6 = vweird.f32 %v1372_v58 }
0x16ea   : > { %v1385_v39 = vor.u32 1.1754944e-38, %v1384_v0  ;;  %vm1383_vm8 = vcmp.eq.f32.partialorder %v1382_v2, 8.507059e+37 }
0x16ee   : > { %v1944_v60 = vpop.eup %1943 }
0x16ef   : > { %v1374_v25 = vmul.f32 %v1944_v60, %v1372_v58  ;;  %vm1379_vm5 = vweird.f32 %v1944_v60 }
0x16f0   : > { %vm1380_vm7 = vmor %vm1378_vm6, %vm1379_vm5 }
0x16f1   : > { %v1375_v62 = vsub.f32 1.0, %v1374_v25 }
0x16f3   : > { %v1376_v46 = vmul.f32 %v1944_v60, %v1375_v62 }
0x16f5   : > { %v1377_v47 = vadd.f32 %v1944_v60, %v1376_v46 }
0x16f7   : > { %v1381_v40 = vsel %vm1380_vm7, %v1944_v60, %v1377_v47 }
0x16f8   : > { %v1386_v43 = vsel %vm1383_vm8, %v1385_v39, %v1381_v40 }
0x16f9   : > { %v1388_v45 = vmul.f32 %v1386_v43, %v1369_v37 }
0x16fb   : > { %1765 = vmatmul.msk.f32.vlgmr.msra.gmra.mxu3 %vm714_vm4, %v1388_v45 }
0x177e   : > { %v1409_v3 = vpop.f32.mrf.mxu3 }
0x177f   : > { %1766 = vmatmul.msk.f32.vlgmr.msra.gmra.mxu1 %vm614_vm13, %v1409_v3 }
0x17fc   : > { %v1432_v51 = vpop.f32.mrf.mxu1 }
0x17fd   : > { %v1433_v4 = vadd.f32 %v2574_v49, %v1432_v51  ;;  %v1479_v49 = vpop.permute.xlu1 %1478 }
0x17ff   : > { %v1457_v5 = vadd.f32 %v1455_v27, %v1433_v4 }
0x1801   : > { %v1768_v6 = vmul.f32 -1.442695, %v1457_v5 }
0x1803   : > { %1945 = vpow2.f32 %v1768_v6 }
0x1809   : > { %v1946_v12 = vpop.eup %1945 }
0x180a   : > { %v1461_v13 = vadd.f32 1.0, %v1946_v12 }
0x180c   : > { %1947 = vrcp.f32 %v1461_v13  ;;  %v1473_v9 = vand.u32 2147483648, %v1461_v13  ;;  %v1471_v36 = vand.u32 2147483647, %v1461_v13  ;;  %vm1467_vm4 = vweird.f32 %v1461_v13 }
0x180e   : > { %v1474_v35 = vor.u32 1.1754944e-38, %v1473_v9  ;;  %vm1472_vm10 = vcmp.eq.f32.partialorder %v1471_v36, 8.507059e+37 }
0x1812   : > { %v1948_v7 = vpop.eup %1947 }
0x1813   : > { %v1463_v14 = vmul.f32 %v1948_v7, %v1461_v13  ;;  %vm1468_vm14 = vweird.f32 %v1948_v7 }
0x1814   : > { %vm1469_vm9 = vmor %vm1467_vm4, %vm1468_vm14 }
0x1815   : > { %v1464_v15 = vsub.f32 1.0, %v1463_v14 }
0x1817   : > { %v1465_v10 = vmul.f32 %v1948_v7, %v1464_v15 }
0x1819   : > { %v1466_v11 = vadd.f32 %v1948_v7, %v1465_v10 }
0x181b   : > { %v1470_v16 = vsel %vm1469_vm9, %v1948_v7, %v1466_v11 }
0x181c   : > { %v1475_v28 = vsel %vm1472_vm10, %v1474_v35, %v1470_v16 }
0x181d   : > { %v1481_v17 = vmul.f32 %v1479_v49, %v1475_v28  ;;  %v1488_v18 = vsub.f32 1.0, %v1475_v28  ;;  %v1494_v50 = vmul.f32 %v1475_v28, %v2691_v48 }
0x181f   : > { %1483 = vrot.lane.b32.xlu2 %v1481_v17, %s2223_s14 }
0x1879   : > { %v1484_v29 = vpop.permute.xlu2 %1483 }
0x187a   : > { %v1486_v30 = vadd.f32 %v1484_v29, %v1433_v4 }
0x187c   : > { %1949 = vtanh.f32 %v1486_v30 }
0x1882   : > { %v1950_v31 = vpop.eup %1949 }
0x1883   : > { %1490 = vrot.lane.b32.xlu1 %v1950_v31, %s2221_s24 }
0x18f5   : > { %v1491_v20 = vpop.permute.xlu1 %1490 }
0x18f6   : > { %v1493_v59 = vmul.f32 %v1491_v20, %v1488_v18 }
0x18f8   : > { %v1495_v52 = vadd.f32 %v1494_v50, %v1493_v59 }
0x18fa   : > { %1497 = vrot.lane.b32.xlu0 %v1495_v52, %s2221_s24 }
0x196c   : > { %v1498_v61 = vpop.permute.xlu0 %1497 }
0x196d   : > { %v1500_v26 = vsel %vm574_vm1, %v1498_v61, 0.0 }
0x196e   : > { %1501 = vadd.xlane.f32.xlu1 %v1500_v26 }
0x19e1   : > { %v1502_v27 = vpop.xlane.xlu1 %1501 }
0x19e2   : > { %v1503_v32 = vmul.f32 %v1502_v27, %v2442_v23 }
0x19e4   : > { %v1504_v33 = vsub.f32 %v1495_v52, %v1503_v32 }
0x19e6   : > { %v1505_v38 = vmul.f32 %v1504_v33, %v1504_v33 }
0x19e8   : > { %1507 = vrot.lane.b32.xlu2 %v1505_v38, %s2221_s24 }
0x1a42   : > { %v1508_v24 = vpop.permute.xlu2 %1507 }
0x1a43   : > { %v1510_v19 = vsel %vm574_vm1, %v1508_v24, 0.0 }
0x1a44   : > { %1511 = vadd.xlane.f32.xlu0 %v1510_v19 }
0x1ab7   : > { %v1512_v48 = vpop.xlane.xlu0 %1511 }
0x1ab8   : > { %v1513_v34 = vmul.f32 %v1512_v48, %v2442_v23 }
0x1aba   : > { %v1514_v41 = vadd.f32 1e-05, %v1513_v34 }
0x1abc   : > { %1951 = vrsqrt.f32 %v1514_v41  ;;  %vm1521_vm12 = vweird.f32 %v1514_v41 }
0x1ac2   : > { %v1952_v42 = vpop.eup %1951 }
0x1ac3   : > { %v1516_v44 = vmul.f32 %v1952_v42, %v1514_v41  ;;  %vm1522_vm11 = vweird.f32 %v1952_v42 }
0x1ac4   : > { %vm1523_vm15 = vmor %vm1521_vm12, %vm1522_vm11 }
0x1ac5   : > { %v1517_v53 = vmul.f32 %v1952_v42, %v1516_v44 }
0x1ac7   : > { %v1518_v54 = vmul.f32 0.5, %v1517_v53 }
0x1ac9   : > { %v1519_v55 = vsub.f32 1.5, %v1518_v54 }
0x1acb   : > { %v1520_v56 = vmul.f32 %v1952_v42, %v1519_v55 }
0x1acd   : > { %v1524_v1 = vsel %vm1523_vm15, %v1952_v42, %v1520_v56 }
0x1ace   : > { %v1525_v37 = vmul.f32 %v1524_v1, %v1504_v33 }
0x1ad0   : > { %v1526_v21 = vmul.f32 %v1525_v37, %v2591_v57 }
0x1ad2   : > { %v1527_v58 = vadd.f32 %v1526_v21, %v2593_v63 }
0x1ad4   : > { %1529 = vrot.lane.b32.xlu2 %v1527_v58, %s2221_s24 }
0x1b2e   : > { %v1530_v23 = vpop.permute.xlu2 %1529 }
0x1b2f   : > { %1769 = vmatmul.msk.f32.vlgmr.msrb.gmra.mxu3 %vm614_vm13, %v1530_v23 }
0x1bb2   : > { %v1550_v60 = vpop.f32.mrf.mxu3 }
0x1bb3   : > { %v1551_v25 = vadd.f32 %v2607_v8, %v1550_v60 }
0x1bb5   : > { %v1553_v62 = vmax.f32 %v1551_v25, 0.0 }
0x1bb7   : > { %1570 = vmatmul.f32.vlgmr.msra.gmra.mxu0 %v1553_v62 }
0x1c34   : > { %v1571_v0 = vpop.f32.mrf.mxu0 }
0x1c35   : > { %1575 = vrot.lane.b32.xlu2 %v1571_v0, %s2222_s26 }
0x1c8f   : > { %v1576_v46 = vpop.permute.xlu2 %1575 }
0x1c90   : > { %v1578_v2 = vadd.f32 %v1576_v46, %v1495_v52 }
0x1c92   : > { %v1579_v47 = vadd.f32 %v1578_v2, %v2615_v22 }
0x1c94   : > { %1581 = vrot.lane.b32.xlu2 %v1579_v47, %s2221_s24 }
0x1cee   : > { %v1582_v57 = vpop.permute.xlu2 %1581 }
0x1cef   : > { %1584 = vst.msk [vmem:[%s469_s13] sm:$0x3f] %vm574_vm1, %v1582_v57 }
0x1cf0 PF: > { %p22_p1 = scmp.ge.s32.totalorder %s2361_s15, 4   ;;  %s2768_s30 = smov %s2201_s10 }
0x1cf1   : > { %s2769_s10 = smov %s2205_s11  ;;  %s2770_s11 = smov %s2372_s22 }
0x1cf2   : > { %s2771_s12 = smov %s2361_s15  ;;  %24 = sbr.rel (!%p22_p1) target bundleno = 6 (0x6), region = 123 }
0x1cf7   :  { %1604 = vsyncpa [#allocation3], 1 }
0x1cf8   :  { %1606 = vsyncpa [#allocation3 + $0x1], 1 }
0x1cf9   :  { %1607 = vsyncpa [#allocation5], 1 }
0x1cfa   :  { %1608 = vsyncpa [#allocation8], 1 }
0x1cfb   :  { %1609 = vsyncpa [#allocation11], 1 }

</bundles_post_ra>
